<compile_context>
chip_gen: v7x
topology: tpu7x:2x2x1
jax: 0.10.0
libtpu: 0.0.40
codegen_flags: <defaults>
</compile_context>

<pallas_src>
import jax
import jax.numpy as jnp
from jax.experimental import pallas as pl
from jax.experimental.pallas import tpu as pltpu

# ----------------------- mini BERT configuration ---------------------------
VOCAB      = 128
HIDDEN     = 32
N_LAYERS   = 2
N_HEADS    = 2
HEAD_DIM   = HIDDEN // N_HEADS
INTER      = 64
MAX_POS    = 16
NUM_LABELS = 39
LN_EPS     = 1e-12
HPAD       = 128                       # lane-dense feature slab width
QKV_BLOCKS = 1 + 2 * N_HEADS           # [Q | K_h0..K_h{H-1} | V_h0..V_h{H-1}]
QKV_W      = QKV_BLOCKS * HPAD         # 640


def _vmem_specs(n):
    return [pl.BlockSpec(memory_space=pltpu.MemorySpace.VMEM) for _ in range(n)]


# --------------------------- in-kernel helpers -------------------------------
def _masked_layernorm(x, g, b, fmask):
    """LayerNorm over the first HIDDEN lanes; padded lanes stay exactly zero."""
    inv_n = 1.0 / HIDDEN
    mu = jnp.sum(x * fmask, axis=-1, keepdims=True) * inv_n
    xc = (x - mu) * fmask
    var = jnp.sum(xc * xc, axis=-1, keepdims=True) * inv_n
    return xc * jax.lax.rsqrt(var + LN_EPS) * g + b


def _gelu_tanh(y):
    # TODO(synk): HF BERT defaults to the exact erf GELU; tanh approximation used here.
    c = 0.7978845608028654   # sqrt(2/pi)
    return 0.5 * y * (1.0 + jnp.tanh(c * (y + 0.044715 * y * y * y)))


# ------------------------ the single fused kernel ----------------------------
def _bert_fwd_kernel(emb_ref, mask_ref, sel_ref, onehot_ref,
                     eg_ref, eb_ref,
                     wqkv_ref, bqkv_ref, wo_ref, bo_ref, ln1g_ref, ln1b_ref,
                     wi_ref, bi_ref, wf_ref, bf_ref, ln2g_ref, ln2b_ref,
                     pw_ref, pb_ref, cw_ref, cb_ref,
                     logits_ref, loss_ref):
    """Embedding-LN -> N_LAYERS encoder layers -> pooler -> classifier -> loss."""
    lane = jax.lax.broadcasted_iota(jnp.int32, (1, HPAD), 1)
    fmask = (lane < HIDDEN).astype(jnp.float32)
    scale = 1.0 / (HEAD_DIM ** 0.5)
    dims = (((1,), (1,)), ((), ()))                       # contract lane dims

    add_mask = mask_ref[...]                              # (T, T), loaded once
    x = _masked_layernorm(emb_ref[...], eg_ref[...], eb_ref[...], fmask)

    for l in range(N_LAYERS):                             # static unroll (2 layers)
        # Fused, head-pre-masked QKV projection -> (T, 640), lane-dense.
        xw = x.astype(jnp.bfloat16)
        qkv = jnp.dot(xw, wqkv_ref[l],
                      preferred_element_type=jnp.float32) + bqkv_ref[l]
        q = qkv[:, 0:HPAD].astype(jnp.bfloat16)

        ctx = jnp.zeros_like(x)
        for h in range(N_HEADS):
            # K/V head blocks were masked at pack time: no in-kernel VPU masks,
            # and q needs no masking (contraction only sees K's nonzero lanes).
            k_h = qkv[:, (1 + h) * HPAD:(2 + h) * HPAD].astype(jnp.bfloat16)
            v_h = qkv[:, (1 + N_HEADS + h) * HPAD:
                         (2 + N_HEADS + h) * HPAD].astype(jnp.bfloat16)
            s = jax.lax.dot_general(q, k_h, dims,
                                    preferred_element_type=jnp.float32)
            s = s * scale + add_mask
            s = s - jnp.max(s, axis=-1, keepdims=True)
            p = jnp.exp(s)
            p = p * pl.reciprocal(jnp.sum(p, axis=-1, keepdims=True), approx=True)
            ctx = ctx + jnp.dot(p.astype(jnp.bfloat16), v_h,
                                preferred_element_type=jnp.float32)

        attn = jnp.dot(ctx.astype(jnp.bfloat16), wo_ref[l],
                       preferred_element_type=jnp.float32) + bo_ref[l]
        h1 = _masked_layernorm(attn + x, ln1g_ref[l], ln1b_ref[l], fmask)

        inter = _gelu_tanh(jnp.dot(h1.astype(jnp.bfloat16), wi_ref[l],
                                   preferred_element_type=jnp.float32) + bi_ref[l])
        ffn = jnp.dot(inter.astype(jnp.bfloat16), wf_ref[l],
                      preferred_element_type=jnp.float32) + bf_ref[l]
        x = _masked_layernorm(ffn + h1, ln2g_ref[l], ln2b_ref[l], fmask)

    # CLS-row extraction as a tiny lane-dense selection matmul (exact, f32).
    cls = jnp.dot(sel_ref[...], x, preferred_element_type=jnp.float32)  # (B,128)

    pooled = jnp.tanh(jnp.dot(cls.astype(jnp.bfloat16), pw_ref[...],
                              preferred_element_type=jnp.float32) + pb_ref[...])
    logits = jnp.dot(pooled.astype(jnp.bfloat16), cw_ref[...],
                     preferred_element_type=jnp.float32) + cb_ref[...]
    logits_ref[...] = logits.astype(logits_ref.dtype)

    # Masked log-softmax + mean NLL over the first NUM_LABELS lanes.
    ml = jnp.where(lane < NUM_LABELS, logits, -1e30)
    mx = jnp.max(ml, axis=-1, keepdims=True)
    e = jnp.exp(ml - mx)
    lse = mx + jnp.log(jnp.sum(e, axis=-1, keepdims=True))
    logp = ml - lse
    nll = -jnp.sum(onehot_ref[...] * logp, axis=-1, keepdims=True)      # (B,1)
    loss_ref[...] = jnp.sum(nll, axis=0, keepdims=True) * (1.0 / nll.shape[0])


def bert_fused_call(emb_pad, mask_tt, sel, onehot, pp):
    b = sel.shape[0]
    return pl.pallas_call(
        _bert_fwd_kernel,
        out_shape=(jax.ShapeDtypeStruct((b, HPAD), jnp.float32),
                   jax.ShapeDtypeStruct((1, 1), jnp.float32)),
        in_specs=_vmem_specs(22),
        out_specs=(pl.BlockSpec(memory_space=pltpu.MemorySpace.VMEM),
                   pl.BlockSpec(memory_space=pltpu.MemorySpace.VMEM)),
    )(emb_pad, mask_tt, sel, onehot,
      pp["emb_ln_g"], pp["emb_ln_b"],
      pp["wqkv"], pp["bqkv"], pp["wo"], pp["bo"], pp["ln1_g"], pp["ln1_b"],
      pp["wi"], pp["bi"], pp["wf"], pp["bf"], pp["ln2_g"], pp["ln2_b"],
      pp["pool_w"], pp["pool_b"], pp["cls_w"], pp["cls_b"])


# ------------------------------ parameters ----------------------------------
def init_params(key):
    keys = iter(jax.random.split(key, 64))

    def norm(shape):
        return 0.02 * jax.random.normal(next(keys), shape, dtype=jnp.float32)

    params = {
        "word_emb": norm((VOCAB, HIDDEN)),
        "pos_emb":  norm((MAX_POS, HIDDEN)),
        "type_emb": norm((2, HIDDEN)),
        "emb_ln_g": jnp.ones((HIDDEN,), jnp.float32),
        "emb_ln_b": jnp.zeros((HIDDEN,), jnp.float32),
        "pool_w":   norm((HIDDEN, HIDDEN)),
        "pool_b":   jnp.zeros((HIDDEN,), jnp.float32),
        "cls_w":    norm((HIDDEN, NUM_LABELS)),
        "cls_b":    jnp.zeros((NUM_LABELS,), jnp.float32),
        "layers":   [],
    }
    for _ in range(N_LAYERS):
        params["layers"].append({
            "wq": norm((HIDDEN, HIDDEN)), "bq": jnp.zeros((HIDDEN,), jnp.float32),
            "wk": norm((HIDDEN, HIDDEN)), "bk": jnp.zeros((HIDDEN,), jnp.float32),
            "wv": norm((HIDDEN, HIDDEN)), "bv": jnp.zeros((HIDDEN,), jnp.float32),
            "wo": norm((HIDDEN, HIDDEN)), "bo": jnp.zeros((HIDDEN,), jnp.float32),
            "ln1_g": jnp.ones((HIDDEN,), jnp.float32),
            "ln1_b": jnp.zeros((HIDDEN,), jnp.float32),
            "wi": norm((HIDDEN, INTER)),  "bi": jnp.zeros((INTER,), jnp.float32),
            "wf": norm((INTER, HIDDEN)),  "bf": jnp.zeros((HIDDEN,), jnp.float32),
            "ln2_g": jnp.ones((HIDDEN,), jnp.float32),
            "ln2_b": jnp.zeros((HIDDEN,), jnp.float32),
        })
    return params


# ----------------- one-time packing into lane-dense slabs --------------------
def _pad2(w, rows=HPAD, cols=HPAD):
    r, c = w.shape
    return jnp.pad(w, ((0, rows - r), (0, cols - c)))


def _pad_vec(v, cols=HPAD):
    return jnp.pad(v.reshape(1, -1), ((0, 0), (0, cols - v.shape[0])))


def pack_params(params):
    """Pad/stack/cast all weights once; this is the stored parameter format."""
    col = jnp.arange(HPAD)

    def head_mask(h):
        return ((col >= h * HEAD_DIM) & (col < (h + 1) * HEAD_DIM)).astype(jnp.float32)

    packed = {
        # Embedding tables padded to 128 lanes so the per-call gather output
        # is already lane-dense (no per-call padding glue).
        "word_emb": jnp.pad(params["word_emb"], ((0, 0), (0, HPAD - HIDDEN))),
        "pos_emb":  jnp.pad(params["pos_emb"],  ((0, 0), (0, HPAD - HIDDEN))),
        "type_emb": jnp.pad(params["type_emb"], ((0, 0), (0, HPAD - HIDDEN))),
        "emb_ln_g": _pad_vec(params["emb_ln_g"]),
        "emb_ln_b": _pad_vec(params["emb_ln_b"]),
        "pool_w":   _pad2(params["pool_w"]).astype(jnp.bfloat16),
        "pool_b":   _pad_vec(params["pool_b"]),
        "cls_w":    _pad2(params["cls_w"]).astype(jnp.bfloat16),
        "cls_b":    _pad_vec(params["cls_b"]),
    }

    wqkv, bqkv, wo, bo = [], [], [], []
    ln1g, ln1b, wi, bi, wf, bf_, ln2g, ln2b = [], [], [], [], [], [], [], []
    for lp in params["layers"]:
        wq_p, wk_p, wv_p = _pad2(lp["wq"]), _pad2(lp["wk"]), _pad2(lp["wv"])
        bq_p, bk_p, bv_p = _pad_vec(lp["bq"]), _pad_vec(lp["bk"]), _pad_vec(lp["bv"])
        k_blk = [wk_p * head_mask(h)[None, :] for h in range(N_HEADS)]
        v_blk = [wv_p * head_mask(h)[None, :] for h in range(N_HEADS)]
        bk_blk = [bk_p * head_mask(h)[None, :] for h in range(N_HEADS)]
        bv_blk = [bv_p * head_mask(h)[None, :] for h in range(N_HEADS)]
        wqkv.append(jnp.concatenate([wq_p] + k_blk + v_blk, axis=1).astype(jnp.bfloat16))
        bqkv.append(jnp.concatenate([bq_p] + bk_blk + bv_blk, axis=1))
        wo.append(_pad2(lp["wo"]).astype(jnp.bfloat16));  bo.append(_pad_vec(lp["bo"]))
        ln1g.append(_pad_vec(lp["ln1_g"]));               ln1b.append(_pad_vec(lp["ln1_b"]))
        wi.append(_pad2(lp["wi"]).astype(jnp.bfloat16));  bi.append(_pad_vec(lp["bi"]))
        wf.append(_pad2(lp["wf"]).astype(jnp.bfloat16));  bf_.append(_pad_vec(lp["bf"]))
        ln2g.append(_pad_vec(lp["ln2_g"]));               ln2b.append(_pad_vec(lp["ln2_b"]))

    packed.update({
        "wqkv": jnp.stack(wqkv), "bqkv": jnp.stack(bqkv),           # (L,128,640)/(L,1,640)
        "wo": jnp.stack(wo),     "bo": jnp.stack(bo),
        "ln1_g": jnp.stack(ln1g), "ln1_b": jnp.stack(ln1b),
        "wi": jnp.stack(wi),     "bi": jnp.stack(bi),
        "wf": jnp.stack(wf),     "bf": jnp.stack(bf_),
        "ln2_g": jnp.stack(ln2g), "ln2_b": jnp.stack(ln2b),
    })
    return packed


# ------------------------------ forward pass --------------------------------
def bert_forward(packed, input_ids, labels, attn_mask):
    """Returns (loss, logits) like BertForSequenceClassification (eval mode)."""
    b, s = input_ids.shape
    t = b * s

    # Embeddings (token + position + token_type[=0]); tables pre-padded to 128.
    tok = jnp.take(packed["word_emb"], input_ids, axis=0)               # (B,S,128)
    pos = packed["pos_emb"][:s][None, :, :]
    typ = packed["type_emb"][0][None, None, :]
    emb_pad = (tok + pos + typ).reshape(t, HPAD)                        # (T,128)

    # Additive (T, T) attention mask, built once and loaded into VMEM once:
    #   * -10000 for padded keys within a batch (HF semantics),
    #   * -1e9 for cross-batch pairs so tokens only attend inside their batch.
    add_mask = (1.0 - attn_mask.astype(jnp.float32)) * -10000.0         # (B,S)
    key_add = add_mask.reshape(t)
    batch_ids = jnp.repeat(jnp.arange(b), s)
    same_batch = batch_ids[:, None] == batch_ids[None, :]
    mask_tt = jnp.where(same_batch, key_add[None, :], -1e9).astype(jnp.float32)

    sel = jax.nn.one_hot(jnp.arange(b) * s, t, dtype=jnp.float32)       # (B,T) CLS rows
    onehot = jax.nn.one_hot(labels, HPAD, dtype=jnp.float32)            # (B,128)

    # TODO(synk): dropout omitted (eval-mode / deterministic forward).
    logits_pad, loss11 = bert_fused_call(emb_pad, mask_tt, sel, onehot, packed)
    return loss11[0, 0], logits_pad[:, :NUM_LABELS]


# ---------------------------------- main -------------------------------------
if __name__ == "__main__":
    root = jax.random.PRNGKey(0)
    pkey, tkey, lkey = jax.random.split(root, 3)
    params = init_params(pkey)
    packed = jax.block_until_ready(pack_params(params))   # one-time packing

    B, S = 2, 8
    texts = jax.random.randint(tkey, (B, S), 0, VOCAB, dtype=jnp.int32)
    labels = jax.random.randint(lkey, (B,), 0, NUM_LABELS, dtype=jnp.int32)
    attn_mask = jnp.array([[1, 1, 1, 1, 1, 1, 0, 0],
                           [1, 1, 1, 1, 0, 0, 0, 0]], dtype=jnp.int32)

    loss, logits = jax.jit(bert_forward)(packed, texts, labels, attn_mask)
    jax.block_until_ready((loss, logits))
    assert logits.shape == (B, NUM_LABELS) and loss.shape == ()
    assert bool(jnp.isfinite(loss)) and bool(jnp.all(jnp.isfinite(logits)))
    print("KERNEL_OK")
</pallas_src>

<mosaic_0001>
module attributes {stable_mosaic.version = 11 : i64} {
  func.func @_bert_fwd_kernel(%arg0: memref<16x128xf32, #tpu.memory_space<vmem>>, %arg1: memref<16x16xf32, #tpu.memory_space<vmem>>, %arg2: memref<2x16xf32, #tpu.memory_space<vmem>>, %arg3: memref<2x128xf32, #tpu.memory_space<vmem>>, %arg4: memref<1x128xf32, #tpu.memory_space<vmem>>, %arg5: memref<1x128xf32, #tpu.memory_space<vmem>>, %arg6: memref<2x128x640xbf16, #tpu.memory_space<vmem>>, %arg7: memref<2x1x640xf32, #tpu.memory_space<vmem>>, %arg8: memref<2x128x128xbf16, #tpu.memory_space<vmem>>, %arg9: memref<2x1x128xf32, #tpu.memory_space<vmem>>, %arg10: memref<2x1x128xf32, #tpu.memory_space<vmem>>, %arg11: memref<2x1x128xf32, #tpu.memory_space<vmem>>, %arg12: memref<2x128x128xbf16, #tpu.memory_space<vmem>>, %arg13: memref<2x1x128xf32, #tpu.memory_space<vmem>>, %arg14: memref<2x128x128xbf16, #tpu.memory_space<vmem>>, %arg15: memref<2x1x128xf32, #tpu.memory_space<vmem>>, %arg16: memref<2x1x128xf32, #tpu.memory_space<vmem>>, %arg17: memref<2x1x128xf32, #tpu.memory_space<vmem>>, %arg18: memref<128x128xbf16, #tpu.memory_space<vmem>>, %arg19: memref<1x128xf32, #tpu.memory_space<vmem>>, %arg20: memref<128x128xbf16, #tpu.memory_space<vmem>>, %arg21: memref<1x128xf32, #tpu.memory_space<vmem>>, %arg22: memref<2x128xf32, #tpu.memory_space<vmem>>, %arg23: memref<1x1xf32, #tpu.memory_space<vmem>>) attributes {dimension_semantics = [], scalar_prefetch = 0 : i64, scratch_operands = 0 : i64, tpu.core_type = #tpu.core_type<tc>} {
    %0 = tpu.iota {dimensions = array<i32: 1>} : vector<1x128xi32>
    %c32_i32 = arith.constant 32 : i32
    %1 = vector.broadcast %c32_i32 : i32 to vector<1x128xi32>
    %2 = arith.cmpi slt, %0, %1 : vector<1x128xi32>
    %3 = arith.extui %2 : vector<1x128xi1> to vector<1x128xi32>
    %4 = arith.sitofp %3 : vector<1x128xi32> to vector<1x128xf32>
    %c0 = arith.constant 0 : index
    %c0_0 = arith.constant 0 : index
    %5 = vector.load %arg1[%c0, %c0_0] : memref<16x16xf32, #tpu.memory_space<vmem>>, vector<16x16xf32>
    %c0_1 = arith.constant 0 : index
    %c0_2 = arith.constant 0 : index
    %6 = vector.load %arg0[%c0_1, %c0_2] : memref<16x128xf32, #tpu.memory_space<vmem>>, vector<16x128xf32>
    %c0_3 = arith.constant 0 : index
    %c0_4 = arith.constant 0 : index
    %7 = vector.load %arg4[%c0_3, %c0_4] : memref<1x128xf32, #tpu.memory_space<vmem>>, vector<1x128xf32>
    %c0_5 = arith.constant 0 : index
    %c0_6 = arith.constant 0 : index
    %8 = vector.load %arg5[%c0_5, %c0_6] : memref<1x128xf32, #tpu.memory_space<vmem>>, vector<1x128xf32>
    %9 = vector.broadcast %4 : vector<1x128xf32> to vector<16x128xf32>
    %10 = arith.mulf %6, %9 : vector<16x128xf32>
    %cst = arith.constant dense<0.000000e+00> : vector<16xf32>
    %11 = vector.multi_reduction <add>, %10, %cst [1] : vector<16x128xf32> to vector<16xf32>
    %12 = vector.shape_cast %11 : vector<16xf32> to vector<16x1xf32>
    %cst_7 = arith.constant 3.125000e-02 : f32
    %13 = vector.broadcast %cst_7 : f32 to vector<16x1xf32>
    %14 = arith.mulf %12, %13 : vector<16x1xf32>
    %15 = vector.broadcast %14 : vector<16x1xf32> to vector<16x128xf32>
    %16 = arith.subf %6, %15 : vector<16x128xf32>
    %17 = vector.broadcast %4 : vector<1x128xf32> to vector<16x128xf32>
    %18 = arith.mulf %16, %17 : vector<16x128xf32>
    %19 = arith.mulf %18, %18 : vector<16x128xf32>
    %cst_8 = arith.constant dense<0.000000e+00> : vector<16xf32>
    %20 = vector.multi_reduction <add>, %19, %cst_8 [1] : vector<16x128xf32> to vector<16xf32>
    %21 = vector.shape_cast %20 : vector<16xf32> to vector<16x1xf32>
    %cst_9 = arith.constant 3.125000e-02 : f32
    %22 = vector.broadcast %cst_9 : f32 to vector<16x1xf32>
    %23 = arith.mulf %21, %22 : vector<16x1xf32>
    %cst_10 = arith.constant 9.99999996E-13 : f32
    %24 = vector.broadcast %cst_10 : f32 to vector<16x1xf32>
    %25 = arith.addf %23, %24 : vector<16x1xf32>
    %26 = math.rsqrt %25 : vector<16x1xf32>
    %27 = vector.broadcast %26 : vector<16x1xf32> to vector<16x128xf32>
    %28 = arith.mulf %18, %27 : vector<16x128xf32>
    %29 = vector.broadcast %7 : vector<1x128xf32> to vector<16x128xf32>
    %30 = arith.mulf %28, %29 : vector<16x128xf32>
    %31 = vector.broadcast %8 : vector<1x128xf32> to vector<16x128xf32>
    %32 = arith.addf %30, %31 : vector<16x128xf32>
    %33 = arith.truncf %32 : vector<16x128xf32> to vector<16x128xbf16>
    %c0_11 = arith.constant 0 : index
    %c0_12 = arith.constant 0 : index
    %c0_13 = arith.constant 0 : index
    %34 = vector.load %arg6[%c0_11, %c0_12, %c0_13] : memref<2x128x640xbf16, #tpu.memory_space<vmem>>, vector<1x128x640xbf16>
    %35 = vector.shape_cast %34 : vector<1x128x640xbf16> to vector<128x640xbf16>
    %cst_14 = arith.constant dense<0.000000e+00> : vector<16x640xf32>
    %36 = tpu.matmul %33, %35, %cst_14 {dimension_numbers = #tpu.dot_dimension_numbers<[1], [0], [0], [1], [0, 0, 1, 1], [], []>} : vector<16x128xbf16>, vector<128x640xbf16>, vector<16x640xf32> -> vector<16x640xf32>
    %c0_15 = arith.constant 0 : index
    %c0_16 = arith.constant 0 : index
    %c0_17 = arith.constant 0 : index
    %37 = vector.load %arg7[%c0_15, %c0_16, %c0_17] : memref<2x1x640xf32, #tpu.memory_space<vmem>>, vector<1x1x640xf32>
    %38 = vector.shape_cast %37 : vector<1x1x640xf32> to vector<1x640xf32>
    %39 = vector.broadcast %38 : vector<1x640xf32> to vector<16x640xf32>
    %40 = arith.addf %36, %39 : vector<16x640xf32>
    %41 = vector.extract_strided_slice %40 {offsets = [0, 0], sizes = [16, 128], strides = [1, 1]} : vector<16x640xf32> to vector<16x128xf32>
    %42 = arith.truncf %41 : vector<16x128xf32> to vector<16x128xbf16>
    %cst_18 = arith.constant 0.000000e+00 : f32
    %43 = vector.broadcast %cst_18 : f32 to vector<16x128xf32>
    %44 = vector.extract_strided_slice %40 {offsets = [0, 128], sizes = [16, 128], strides = [1, 1]} : vector<16x640xf32> to vector<16x128xf32>
    %45 = arith.truncf %44 : vector<16x128xf32> to vector<16x128xbf16>
    %46 = vector.extract_strided_slice %40 {offsets = [0, 384], sizes = [16, 128], strides = [1, 1]} : vector<16x640xf32> to vector<16x128xf32>
    %47 = arith.truncf %46 : vector<16x128xf32> to vector<16x128xbf16>
    %cst_19 = arith.constant dense<0.000000e+00> : vector<16x16xf32>
    %48 = tpu.matmul %42, %45, %cst_19 {dimension_numbers = #tpu.dot_dimension_numbers<[1], [1], [0], [0], [0, 0, 1, 0], [], []>} : vector<16x128xbf16>, vector<16x128xbf16>, vector<16x16xf32> -> vector<16x16xf32>
    %cst_20 = arith.constant 2.500000e-01 : f32
    %49 = vector.broadcast %cst_20 : f32 to vector<16x16xf32>
    %50 = arith.mulf %48, %49 : vector<16x16xf32>
    %51 = arith.addf %50, %5 : vector<16x16xf32>
    %cst_21 = arith.constant dense<0xFF800000> : vector<16xf32>
    %52 = vector.multi_reduction <maximumf>, %51, %cst_21 [1] : vector<16x16xf32> to vector<16xf32>
    %53 = vector.shape_cast %52 : vector<16xf32> to vector<16x1xf32>
    %54 = vector.broadcast %53 : vector<16x1xf32> to vector<16x16xf32>
    %55 = arith.subf %51, %54 : vector<16x16xf32>
    %56 = math.exp %55 : vector<16x16xf32>
    %cst_22 = arith.constant dense<0.000000e+00> : vector<16xf32>
    %57 = vector.multi_reduction <add>, %56, %cst_22 [1] : vector<16x16xf32> to vector<16xf32>
    %58 = vector.shape_cast %57 : vector<16xf32> to vector<16x1xf32>
    %59 = tpu.reciprocal %58 {approx = true} : vector<16x1xf32> -> vector<16x1xf32>
    %60 = vector.broadcast %59 : vector<16x1xf32> to vector<16x16xf32>
    %61 = arith.mulf %56, %60 : vector<16x16xf32>
    %62 = arith.truncf %61 : vector<16x16xf32> to vector<16x16xbf16>
    %cst_23 = arith.constant dense<0.000000e+00> : vector<16x128xf32>
    %63 = tpu.matmul %62, %47, %cst_23 {dimension_numbers = #tpu.dot_dimension_numbers<[1], [0], [0], [1], [0, 0, 1, 1], [], []>} : vector<16x16xbf16>, vector<16x128xbf16>, vector<16x128xf32> -> vector<16x128xf32>
    %64 = arith.addf %43, %63 : vector<16x128xf32>
    %65 = vector.extract_strided_slice %40 {offsets = [0, 256], sizes = [16, 128], strides = [1, 1]} : vector<16x640xf32> to vector<16x128xf32>
    %66 = arith.truncf %65 : vector<16x128xf32> to vector<16x128xbf16>
    %67 = vector.extract_strided_slice %40 {offsets = [0, 512], sizes = [16, 128], strides = [1, 1]} : vector<16x640xf32> to vector<16x128xf32>
    %68 = arith.truncf %67 : vector<16x128xf32> to vector<16x128xbf16>
    %cst_24 = arith.constant dense<0.000000e+00> : vector<16x16xf32>
    %69 = tpu.matmul %42, %66, %cst_24 {dimension_numbers = #tpu.dot_dimension_numbers<[1], [1], [0], [0], [0, 0, 1, 0], [], []>} : vector<16x128xbf16>, vector<16x128xbf16>, vector<16x16xf32> -> vector<16x16xf32>
    %cst_25 = arith.constant 2.500000e-01 : f32
    %70 = vector.broadcast %cst_25 : f32 to vector<16x16xf32>
    %71 = arith.mulf %69, %70 : vector<16x16xf32>
    %72 = arith.addf %71, %5 : vector<16x16xf32>
    %cst_26 = arith.constant dense<0xFF800000> : vector<16xf32>
    %73 = vector.multi_reduction <maximumf>, %72, %cst_26 [1] : vector<16x16xf32> to vector<16xf32>
    %74 = vector.shape_cast %73 : vector<16xf32> to vector<16x1xf32>
    %75 = vector.broadcast %74 : vector<16x1xf32> to vector<16x16xf32>
    %76 = arith.subf %72, %75 : vector<16x16xf32>
    %77 = math.exp %76 : vector<16x16xf32>
    %cst_27 = arith.constant dense<0.000000e+00> : vector<16xf32>
    %78 = vector.multi_reduction <add>, %77, %cst_27 [1] : vector<16x16xf32> to vector<16xf32>
    %79 = vector.shape_cast %78 : vector<16xf32> to vector<16x1xf32>
    %80 = tpu.reciprocal %79 {approx = true} : vector<16x1xf32> -> vector<16x1xf32>
    %81 = vector.broadcast %80 : vector<16x1xf32> to vector<16x16xf32>
    %82 = arith.mulf %77, %81 : vector<16x16xf32>
    %83 = arith.truncf %82 : vector<16x16xf32> to vector<16x16xbf16>
    %cst_28 = arith.constant dense<0.000000e+00> : vector<16x128xf32>
    %84 = tpu.matmul %83, %68, %cst_28 {dimension_numbers = #tpu.dot_dimension_numbers<[1], [0], [0], [1], [0, 0, 1, 1], [], []>} : vector<16x16xbf16>, vector<16x128xbf16>, vector<16x128xf32> -> vector<16x128xf32>
    %85 = arith.addf %64, %84 : vector<16x128xf32>
    %86 = arith.truncf %85 : vector<16x128xf32> to vector<16x128xbf16>
    %c0_29 = arith.constant 0 : index
    %c0_30 = arith.constant 0 : index
    %c0_31 = arith.constant 0 : index
    %87 = vector.load %arg8[%c0_29, %c0_30, %c0_31] : memref<2x128x128xbf16, #tpu.memory_space<vmem>>, vector<1x128x128xbf16>
    %88 = vector.shape_cast %87 : vector<1x128x128xbf16> to vector<128x128xbf16>
    %cst_32 = arith.constant dense<0.000000e+00> : vector<16x128xf32>
    %89 = tpu.matmul %86, %88, %cst_32 {dimension_numbers = #tpu.dot_dimension_numbers<[1], [0], [0], [1], [0, 0, 1, 1], [], []>} : vector<16x128xbf16>, vector<128x128xbf16>, vector<16x128xf32> -> vector<16x128xf32>
    %c0_33 = arith.constant 0 : index
    %c0_34 = arith.constant 0 : index
    %c0_35 = arith.constant 0 : index
    %90 = vector.load %arg9[%c0_33, %c0_34, %c0_35] : memref<2x1x128xf32, #tpu.memory_space<vmem>>, vector<1x1x128xf32>
    %91 = vector.shape_cast %90 : vector<1x1x128xf32> to vector<1x128xf32>
    %92 = vector.broadcast %91 : vector<1x128xf32> to vector<16x128xf32>
    %93 = arith.addf %89, %92 : vector<16x128xf32>
    %94 = arith.addf %93, %32 : vector<16x128xf32>
    %c0_36 = arith.constant 0 : index
    %c0_37 = arith.constant 0 : index
    %c0_38 = arith.constant 0 : index
    %95 = vector.load %arg10[%c0_36, %c0_37, %c0_38] : memref<2x1x128xf32, #tpu.memory_space<vmem>>, vector<1x1x128xf32>
    %96 = vector.shape_cast %95 : vector<1x1x128xf32> to vector<1x128xf32>
    %c0_39 = arith.constant 0 : index
    %c0_40 = arith.constant 0 : index
    %c0_41 = arith.constant 0 : index
    %97 = vector.load %arg11[%c0_39, %c0_40, %c0_41] : memref<2x1x128xf32, #tpu.memory_space<vmem>>, vector<1x1x128xf32>
    %98 = vector.shape_cast %97 : vector<1x1x128xf32> to vector<1x128xf32>
    %99 = vector.broadcast %4 : vector<1x128xf32> to vector<16x128xf32>
    %100 = arith.mulf %94, %99 : vector<16x128xf32>
    %cst_42 = arith.constant dense<0.000000e+00> : vector<16xf32>
    %101 = vector.multi_reduction <add>, %100, %cst_42 [1] : vector<16x128xf32> to vector<16xf32>
    %102 = vector.shape_cast %101 : vector<16xf32> to vector<16x1xf32>
    %cst_43 = arith.constant 3.125000e-02 : f32
    %103 = vector.broadcast %cst_43 : f32 to vector<16x1xf32>
    %104 = arith.mulf %102, %103 : vector<16x1xf32>
    %105 = vector.broadcast %104 : vector<16x1xf32> to vector<16x128xf32>
    %106 = arith.subf %94, %105 : vector<16x128xf32>
    %107 = vector.broadcast %4 : vector<1x128xf32> to vector<16x128xf32>
    %108 = arith.mulf %106, %107 : vector<16x128xf32>
    %109 = arith.mulf %108, %108 : vector<16x128xf32>
    %cst_44 = arith.constant dense<0.000000e+00> : vector<16xf32>
    %110 = vector.multi_reduction <add>, %109, %cst_44 [1] : vector<16x128xf32> to vector<16xf32>
    %111 = vector.shape_cast %110 : vector<16xf32> to vector<16x1xf32>
    %cst_45 = arith.constant 3.125000e-02 : f32
    %112 = vector.broadcast %cst_45 : f32 to vector<16x1xf32>
    %113 = arith.mulf %111, %112 : vector<16x1xf32>
    %cst_46 = arith.constant 9.99999996E-13 : f32
    %114 = vector.broadcast %cst_46 : f32 to vector<16x1xf32>
    %115 = arith.addf %113, %114 : vector<16x1xf32>
    %116 = math.rsqrt %115 : vector<16x1xf32>
    %117 = vector.broadcast %116 : vector<16x1xf32> to vector<16x128xf32>
    %118 = arith.mulf %108, %117 : vector<16x128xf32>
    %119 = vector.broadcast %96 : vector<1x128xf32> to vector<16x128xf32>
    %120 = arith.mulf %118, %119 : vector<16x128xf32>
    %121 = vector.broadcast %98 : vector<1x128xf32> to vector<16x128xf32>
    %122 = arith.addf %120, %121 : vector<16x128xf32>
    %123 = arith.truncf %122 : vector<16x128xf32> to vector<16x128xbf16>
    %c0_47 = arith.constant 0 : index
    %c0_48 = arith.constant 0 : index
    %c0_49 = arith.constant 0 : index
    %124 = vector.load %arg12[%c0_47, %c0_48, %c0_49] : memref<2x128x128xbf16, #tpu.memory_space<vmem>>, vector<1x128x128xbf16>
    %125 = vector.shape_cast %124 : vector<1x128x128xbf16> to vector<128x128xbf16>
    %cst_50 = arith.constant dense<0.000000e+00> : vector<16x128xf32>
    %126 = tpu.matmul %123, %125, %cst_50 {dimension_numbers = #tpu.dot_dimension_numbers<[1], [0], [0], [1], [0, 0, 1, 1], [], []>} : vector<16x128xbf16>, vector<128x128xbf16>, vector<16x128xf32> -> vector<16x128xf32>
    %c0_51 = arith.constant 0 : index
    %c0_52 = arith.constant 0 : index
    %c0_53 = arith.constant 0 : index
    %127 = vector.load %arg13[%c0_51, %c0_52, %c0_53] : memref<2x1x128xf32, #tpu.memory_space<vmem>>, vector<1x1x128xf32>
    %128 = vector.shape_cast %127 : vector<1x1x128xf32> to vector<1x128xf32>
    %129 = vector.broadcast %128 : vector<1x128xf32> to vector<16x128xf32>
    %130 = arith.addf %126, %129 : vector<16x128xf32>
    %cst_54 = arith.constant 5.000000e-01 : f32
    %131 = vector.broadcast %cst_54 : f32 to vector<16x128xf32>
    %132 = arith.mulf %131, %130 : vector<16x128xf32>
    %cst_55 = arith.constant 4.471500e-02 : f32
    %133 = vector.broadcast %cst_55 : f32 to vector<16x128xf32>
    %134 = arith.mulf %133, %130 : vector<16x128xf32>
    %135 = arith.mulf %134, %130 : vector<16x128xf32>
    %136 = arith.mulf %135, %130 : vector<16x128xf32>
    %137 = arith.addf %130, %136 : vector<16x128xf32>
    %cst_56 = arith.constant 0.797884583 : f32
    %138 = vector.broadcast %cst_56 : f32 to vector<16x128xf32>
    %139 = arith.mulf %138, %137 : vector<16x128xf32>
    %140 = math.tanh %139 : vector<16x128xf32>
    %cst_57 = arith.constant 1.000000e+00 : f32
    %141 = vector.broadcast %cst_57 : f32 to vector<16x128xf32>
    %142 = arith.addf %141, %140 : vector<16x128xf32>
    %143 = arith.mulf %132, %142 : vector<16x128xf32>
    %144 = arith.truncf %143 : vector<16x128xf32> to vector<16x128xbf16>
    %c0_58 = arith.constant 0 : index
    %c0_59 = arith.constant 0 : index
    %c0_60 = arith.constant 0 : index
    %145 = vector.load %arg14[%c0_58, %c0_59, %c0_60] : memref<2x128x128xbf16, #tpu.memory_space<vmem>>, vector<1x128x128xbf16>
    %146 = vector.shape_cast %145 : vector<1x128x128xbf16> to vector<128x128xbf16>
    %cst_61 = arith.constant dense<0.000000e+00> : vector<16x128xf32>
    %147 = tpu.matmul %144, %146, %cst_61 {dimension_numbers = #tpu.dot_dimension_numbers<[1], [0], [0], [1], [0, 0, 1, 1], [], []>} : vector<16x128xbf16>, vector<128x128xbf16>, vector<16x128xf32> -> vector<16x128xf32>
    %c0_62 = arith.constant 0 : index
    %c0_63 = arith.constant 0 : index
    %c0_64 = arith.constant 0 : index
    %148 = vector.load %arg15[%c0_62, %c0_63, %c0_64] : memref<2x1x128xf32, #tpu.memory_space<vmem>>, vector<1x1x128xf32>
    %149 = vector.shape_cast %148 : vector<1x1x128xf32> to vector<1x128xf32>
    %150 = vector.broadcast %149 : vector<1x128xf32> to vector<16x128xf32>
    %151 = arith.addf %147, %150 : vector<16x128xf32>
    %152 = arith.addf %151, %122 : vector<16x128xf32>
    %c0_65 = arith.constant 0 : index
    %c0_66 = arith.constant 0 : index
    %c0_67 = arith.constant 0 : index
    %153 = vector.load %arg16[%c0_65, %c0_66, %c0_67] : memref<2x1x128xf32, #tpu.memory_space<vmem>>, vector<1x1x128xf32>
    %154 = vector.shape_cast %153 : vector<1x1x128xf32> to vector<1x128xf32>
    %c0_68 = arith.constant 0 : index
    %c0_69 = arith.constant 0 : index
    %c0_70 = arith.constant 0 : index
    %155 = vector.load %arg17[%c0_68, %c0_69, %c0_70] : memref<2x1x128xf32, #tpu.memory_space<vmem>>, vector<1x1x128xf32>
    %156 = vector.shape_cast %155 : vector<1x1x128xf32> to vector<1x128xf32>
    %157 = vector.broadcast %4 : vector<1x128xf32> to vector<16x128xf32>
    %158 = arith.mulf %152, %157 : vector<16x128xf32>
    %cst_71 = arith.constant dense<0.000000e+00> : vector<16xf32>
    %159 = vector.multi_reduction <add>, %158, %cst_71 [1] : vector<16x128xf32> to vector<16xf32>
    %160 = vector.shape_cast %159 : vector<16xf32> to vector<16x1xf32>
    %cst_72 = arith.constant 3.125000e-02 : f32
    %161 = vector.broadcast %cst_72 : f32 to vector<16x1xf32>
    %162 = arith.mulf %160, %161 : vector<16x1xf32>
    %163 = vector.broadcast %162 : vector<16x1xf32> to vector<16x128xf32>
    %164 = arith.subf %152, %163 : vector<16x128xf32>
    %165 = vector.broadcast %4 : vector<1x128xf32> to vector<16x128xf32>
    %166 = arith.mulf %164, %165 : vector<16x128xf32>
    %167 = arith.mulf %166, %166 : vector<16x128xf32>
    %cst_73 = arith.constant dense<0.000000e+00> : vector<16xf32>
    %168 = vector.multi_reduction <add>, %167, %cst_73 [1] : vector<16x128xf32> to vector<16xf32>
    %169 = vector.shape_cast %168 : vector<16xf32> to vector<16x1xf32>
    %cst_74 = arith.constant 3.125000e-02 : f32
    %170 = vector.broadcast %cst_74 : f32 to vector<16x1xf32>
    %171 = arith.mulf %169, %170 : vector<16x1xf32>
    %cst_75 = arith.constant 9.99999996E-13 : f32
    %172 = vector.broadcast %cst_75 : f32 to vector<16x1xf32>
    %173 = arith.addf %171, %172 : vector<16x1xf32>
    %174 = math.rsqrt %173 : vector<16x1xf32>
    %175 = vector.broadcast %174 : vector<16x1xf32> to vector<16x128xf32>
    %176 = arith.mulf %166, %175 : vector<16x128xf32>
    %177 = vector.broadcast %154 : vector<1x128xf32> to vector<16x128xf32>
    %178 = arith.mulf %176, %177 : vector<16x128xf32>
    %179 = vector.broadcast %156 : vector<1x128xf32> to vector<16x128xf32>
    %180 = arith.addf %178, %179 : vector<16x128xf32>
    %181 = arith.truncf %180 : vector<16x128xf32> to vector<16x128xbf16>
    %c1 = arith.constant 1 : index
    %c0_76 = arith.constant 0 : index
    %c0_77 = arith.constant 0 : index
    %182 = vector.load %arg6[%c1, %c0_76, %c0_77] : memref<2x128x640xbf16, #tpu.memory_space<vmem>>, vector<1x128x640xbf16>
    %183 = vector.shape_cast %182 : vector<1x128x640xbf16> to vector<128x640xbf16>
    %cst_78 = arith.constant dense<0.000000e+00> : vector<16x640xf32>
    %184 = tpu.matmul %181, %183, %cst_78 {dimension_numbers = #tpu.dot_dimension_numbers<[1], [0], [0], [1], [0, 0, 1, 1], [], []>} : vector<16x128xbf16>, vector<128x640xbf16>, vector<16x640xf32> -> vector<16x640xf32>
    %c1_79 = arith.constant 1 : index
    %c0_80 = arith.constant 0 : index
    %c0_81 = arith.constant 0 : index
    %185 = vector.load %arg7[%c1_79, %c0_80, %c0_81] : memref<2x1x640xf32, #tpu.memory_space<vmem>>, vector<1x1x640xf32>
    %186 = vector.shape_cast %185 : vector<1x1x640xf32> to vector<1x640xf32>
    %187 = vector.broadcast %186 : vector<1x640xf32> to vector<16x640xf32>
    %188 = arith.addf %184, %187 : vector<16x640xf32>
    %189 = vector.extract_strided_slice %188 {offsets = [0, 0], sizes = [16, 128], strides = [1, 1]} : vector<16x640xf32> to vector<16x128xf32>
    %190 = arith.truncf %189 : vector<16x128xf32> to vector<16x128xbf16>
    %cst_82 = arith.constant 0.000000e+00 : f32
    %191 = vector.broadcast %cst_82 : f32 to vector<16x128xf32>
    %192 = vector.extract_strided_slice %188 {offsets = [0, 128], sizes = [16, 128], strides = [1, 1]} : vector<16x640xf32> to vector<16x128xf32>
    %193 = arith.truncf %192 : vector<16x128xf32> to vector<16x128xbf16>
    %194 = vector.extract_strided_slice %188 {offsets = [0, 384], sizes = [16, 128], strides = [1, 1]} : vector<16x640xf32> to vector<16x128xf32>
    %195 = arith.truncf %194 : vector<16x128xf32> to vector<16x128xbf16>
    %cst_83 = arith.constant dense<0.000000e+00> : vector<16x16xf32>
    %196 = tpu.matmul %190, %193, %cst_83 {dimension_numbers = #tpu.dot_dimension_numbers<[1], [1], [0], [0], [0, 0, 1, 0], [], []>} : vector<16x128xbf16>, vector<16x128xbf16>, vector<16x16xf32> -> vector<16x16xf32>
    %cst_84 = arith.constant 2.500000e-01 : f32
    %197 = vector.broadcast %cst_84 : f32 to vector<16x16xf32>
    %198 = arith.mulf %196, %197 : vector<16x16xf32>
    %199 = arith.addf %198, %5 : vector<16x16xf32>
    %cst_85 = arith.constant dense<0xFF800000> : vector<16xf32>
    %200 = vector.multi_reduction <maximumf>, %199, %cst_85 [1] : vector<16x16xf32> to vector<16xf32>
    %201 = vector.shape_cast %200 : vector<16xf32> to vector<16x1xf32>
    %202 = vector.broadcast %201 : vector<16x1xf32> to vector<16x16xf32>
    %203 = arith.subf %199, %202 : vector<16x16xf32>
    %204 = math.exp %203 : vector<16x16xf32>
    %cst_86 = arith.constant dense<0.000000e+00> : vector<16xf32>
    %205 = vector.multi_reduction <add>, %204, %cst_86 [1] : vector<16x16xf32> to vector<16xf32>
    %206 = vector.shape_cast %205 : vector<16xf32> to vector<16x1xf32>
    %207 = tpu.reciprocal %206 {approx = true} : vector<16x1xf32> -> vector<16x1xf32>
    %208 = vector.broadcast %207 : vector<16x1xf32> to vector<16x16xf32>
    %209 = arith.mulf %204, %208 : vector<16x16xf32>
    %210 = arith.truncf %209 : vector<16x16xf32> to vector<16x16xbf16>
    %cst_87 = arith.constant dense<0.000000e+00> : vector<16x128xf32>
    %211 = tpu.matmul %210, %195, %cst_87 {dimension_numbers = #tpu.dot_dimension_numbers<[1], [0], [0], [1], [0, 0, 1, 1], [], []>} : vector<16x16xbf16>, vector<16x128xbf16>, vector<16x128xf32> -> vector<16x128xf32>
    %212 = arith.addf %191, %211 : vector<16x128xf32>
    %213 = vector.extract_strided_slice %188 {offsets = [0, 256], sizes = [16, 128], strides = [1, 1]} : vector<16x640xf32> to vector<16x128xf32>
    %214 = arith.truncf %213 : vector<16x128xf32> to vector<16x128xbf16>
    %215 = vector.extract_strided_slice %188 {offsets = [0, 512], sizes = [16, 128], strides = [1, 1]} : vector<16x640xf32> to vector<16x128xf32>
    %216 = arith.truncf %215 : vector<16x128xf32> to vector<16x128xbf16>
    %cst_88 = arith.constant dense<0.000000e+00> : vector<16x16xf32>
    %217 = tpu.matmul %190, %214, %cst_88 {dimension_numbers = #tpu.dot_dimension_numbers<[1], [1], [0], [0], [0, 0, 1, 0], [], []>} : vector<16x128xbf16>, vector<16x128xbf16>, vector<16x16xf32> -> vector<16x16xf32>
    %cst_89 = arith.constant 2.500000e-01 : f32
    %218 = vector.broadcast %cst_89 : f32 to vector<16x16xf32>
    %219 = arith.mulf %217, %218 : vector<16x16xf32>
    %220 = arith.addf %219, %5 : vector<16x16xf32>
    %cst_90 = arith.constant dense<0xFF800000> : vector<16xf32>
    %221 = vector.multi_reduction <maximumf>, %220, %cst_90 [1] : vector<16x16xf32> to vector<16xf32>
    %222 = vector.shape_cast %221 : vector<16xf32> to vector<16x1xf32>
    %223 = vector.broadcast %222 : vector<16x1xf32> to vector<16x16xf32>
    %224 = arith.subf %220, %223 : vector<16x16xf32>
    %225 = math.exp %224 : vector<16x16xf32>
    %cst_91 = arith.constant dense<0.000000e+00> : vector<16xf32>
    %226 = vector.multi_reduction <add>, %225, %cst_91 [1] : vector<16x16xf32> to vector<16xf32>
    %227 = vector.shape_cast %226 : vector<16xf32> to vector<16x1xf32>
    %228 = tpu.reciprocal %227 {approx = true} : vector<16x1xf32> -> vector<16x1xf32>
    %229 = vector.broadcast %228 : vector<16x1xf32> to vector<16x16xf32>
    %230 = arith.mulf %225, %229 : vector<16x16xf32>
    %231 = arith.truncf %230 : vector<16x16xf32> to vector<16x16xbf16>
    %cst_92 = arith.constant dense<0.000000e+00> : vector<16x128xf32>
    %232 = tpu.matmul %231, %216, %cst_92 {dimension_numbers = #tpu.dot_dimension_numbers<[1], [0], [0], [1], [0, 0, 1, 1], [], []>} : vector<16x16xbf16>, vector<16x128xbf16>, vector<16x128xf32> -> vector<16x128xf32>
    %233 = arith.addf %212, %232 : vector<16x128xf32>
    %234 = arith.truncf %233 : vector<16x128xf32> to vector<16x128xbf16>
    %c1_93 = arith.constant 1 : index
    %c0_94 = arith.constant 0 : index
    %c0_95 = arith.constant 0 : index
    %235 = vector.load %arg8[%c1_93, %c0_94, %c0_95] : memref<2x128x128xbf16, #tpu.memory_space<vmem>>, vector<1x128x128xbf16>
    %236 = vector.shape_cast %235 : vector<1x128x128xbf16> to vector<128x128xbf16>
    %cst_96 = arith.constant dense<0.000000e+00> : vector<16x128xf32>
    %237 = tpu.matmul %234, %236, %cst_96 {dimension_numbers = #tpu.dot_dimension_numbers<[1], [0], [0], [1], [0, 0, 1, 1], [], []>} : vector<16x128xbf16>, vector<128x128xbf16>, vector<16x128xf32> -> vector<16x128xf32>
    %c1_97 = arith.constant 1 : index
    %c0_98 = arith.constant 0 : index
    %c0_99 = arith.constant 0 : index
    %238 = vector.load %arg9[%c1_97, %c0_98, %c0_99] : memref<2x1x128xf32, #tpu.memory_space<vmem>>, vector<1x1x128xf32>
    %239 = vector.shape_cast %238 : vector<1x1x128xf32> to vector<1x128xf32>
    %240 = vector.broadcast %239 : vector<1x128xf32> to vector<16x128xf32>
    %241 = arith.addf %237, %240 : vector<16x128xf32>
    %242 = arith.addf %241, %180 : vector<16x128xf32>
    %c1_100 = arith.constant 1 : index
    %c0_101 = arith.constant 0 : index
    %c0_102 = arith.constant 0 : index
    %243 = vector.load %arg10[%c1_100, %c0_101, %c0_102] : memref<2x1x128xf32, #tpu.memory_space<vmem>>, vector<1x1x128xf32>
    %244 = vector.shape_cast %243 : vector<1x1x128xf32> to vector<1x128xf32>
    %c1_103 = arith.constant 1 : index
    %c0_104 = arith.constant 0 : index
    %c0_105 = arith.constant 0 : index
    %245 = vector.load %arg11[%c1_103, %c0_104, %c0_105] : memref<2x1x128xf32, #tpu.memory_space<vmem>>, vector<1x1x128xf32>
    %246 = vector.shape_cast %245 : vector<1x1x128xf32> to vector<1x128xf32>
    %247 = vector.broadcast %4 : vector<1x128xf32> to vector<16x128xf32>
    %248 = arith.mulf %242, %247 : vector<16x128xf32>
    %cst_106 = arith.constant dense<0.000000e+00> : vector<16xf32>
    %249 = vector.multi_reduction <add>, %248, %cst_106 [1] : vector<16x128xf32> to vector<16xf32>
    %250 = vector.shape_cast %249 : vector<16xf32> to vector<16x1xf32>
    %cst_107 = arith.constant 3.125000e-02 : f32
    %251 = vector.broadcast %cst_107 : f32 to vector<16x1xf32>
    %252 = arith.mulf %250, %251 : vector<16x1xf32>
    %253 = vector.broadcast %252 : vector<16x1xf32> to vector<16x128xf32>
    %254 = arith.subf %242, %253 : vector<16x128xf32>
    %255 = vector.broadcast %4 : vector<1x128xf32> to vector<16x128xf32>
    %256 = arith.mulf %254, %255 : vector<16x128xf32>
    %257 = arith.mulf %256, %256 : vector<16x128xf32>
    %cst_108 = arith.constant dense<0.000000e+00> : vector<16xf32>
    %258 = vector.multi_reduction <add>, %257, %cst_108 [1] : vector<16x128xf32> to vector<16xf32>
    %259 = vector.shape_cast %258 : vector<16xf32> to vector<16x1xf32>
    %cst_109 = arith.constant 3.125000e-02 : f32
    %260 = vector.broadcast %cst_109 : f32 to vector<16x1xf32>
    %261 = arith.mulf %259, %260 : vector<16x1xf32>
    %cst_110 = arith.constant 9.99999996E-13 : f32
    %262 = vector.broadcast %cst_110 : f32 to vector<16x1xf32>
    %263 = arith.addf %261, %262 : vector<16x1xf32>
    %264 = math.rsqrt %263 : vector<16x1xf32>
    %265 = vector.broadcast %264 : vector<16x1xf32> to vector<16x128xf32>
    %266 = arith.mulf %256, %265 : vector<16x128xf32>
    %267 = vector.broadcast %244 : vector<1x128xf32> to vector<16x128xf32>
    %268 = arith.mulf %266, %267 : vector<16x128xf32>
    %269 = vector.broadcast %246 : vector<1x128xf32> to vector<16x128xf32>
    %270 = arith.addf %268, %269 : vector<16x128xf32>
    %271 = arith.truncf %270 : vector<16x128xf32> to vector<16x128xbf16>
    %c1_111 = arith.constant 1 : index
    %c0_112 = arith.constant 0 : index
    %c0_113 = arith.constant 0 : index
    %272 = vector.load %arg12[%c1_111, %c0_112, %c0_113] : memref<2x128x128xbf16, #tpu.memory_space<vmem>>, vector<1x128x128xbf16>
    %273 = vector.shape_cast %272 : vector<1x128x128xbf16> to vector<128x128xbf16>
    %cst_114 = arith.constant dense<0.000000e+00> : vector<16x128xf32>
    %274 = tpu.matmul %271, %273, %cst_114 {dimension_numbers = #tpu.dot_dimension_numbers<[1], [0], [0], [1], [0, 0, 1, 1], [], []>} : vector<16x128xbf16>, vector<128x128xbf16>, vector<16x128xf32> -> vector<16x128xf32>
    %c1_115 = arith.constant 1 : index
    %c0_116 = arith.constant 0 : index
    %c0_117 = arith.constant 0 : index
    %275 = vector.load %arg13[%c1_115, %c0_116, %c0_117] : memref<2x1x128xf32, #tpu.memory_space<vmem>>, vector<1x1x128xf32>
    %276 = vector.shape_cast %275 : vector<1x1x128xf32> to vector<1x128xf32>
    %277 = vector.broadcast %276 : vector<1x128xf32> to vector<16x128xf32>
    %278 = arith.addf %274, %277 : vector<16x128xf32>
    %cst_118 = arith.constant 5.000000e-01 : f32
    %279 = vector.broadcast %cst_118 : f32 to vector<16x128xf32>
    %280 = arith.mulf %279, %278 : vector<16x128xf32>
    %cst_119 = arith.constant 4.471500e-02 : f32
    %281 = vector.broadcast %cst_119 : f32 to vector<16x128xf32>
    %282 = arith.mulf %281, %278 : vector<16x128xf32>
    %283 = arith.mulf %282, %278 : vector<16x128xf32>
    %284 = arith.mulf %283, %278 : vector<16x128xf32>
    %285 = arith.addf %278, %284 : vector<16x128xf32>
    %cst_120 = arith.constant 0.797884583 : f32
    %286 = vector.broadcast %cst_120 : f32 to vector<16x128xf32>
    %287 = arith.mulf %286, %285 : vector<16x128xf32>
    %288 = math.tanh %287 : vector<16x128xf32>
    %cst_121 = arith.constant 1.000000e+00 : f32
    %289 = vector.broadcast %cst_121 : f32 to vector<16x128xf32>
    %290 = arith.addf %289, %288 : vector<16x128xf32>
    %291 = arith.mulf %280, %290 : vector<16x128xf32>
    %292 = arith.truncf %291 : vector<16x128xf32> to vector<16x128xbf16>
    %c1_122 = arith.constant 1 : index
    %c0_123 = arith.constant 0 : index
    %c0_124 = arith.constant 0 : index
    %293 = vector.load %arg14[%c1_122, %c0_123, %c0_124] : memref<2x128x128xbf16, #tpu.memory_space<vmem>>, vector<1x128x128xbf16>
    %294 = vector.shape_cast %293 : vector<1x128x128xbf16> to vector<128x128xbf16>
    %cst_125 = arith.constant dense<0.000000e+00> : vector<16x128xf32>
    %295 = tpu.matmul %292, %294, %cst_125 {dimension_numbers = #tpu.dot_dimension_numbers<[1], [0], [0], [1], [0, 0, 1, 1], [], []>} : vector<16x128xbf16>, vector<128x128xbf16>, vector<16x128xf32> -> vector<16x128xf32>
    %c1_126 = arith.constant 1 : index
    %c0_127 = arith.constant 0 : index
    %c0_128 = arith.constant 0 : index
    %296 = vector.load %arg15[%c1_126, %c0_127, %c0_128] : memref<2x1x128xf32, #tpu.memory_space<vmem>>, vector<1x1x128xf32>
    %297 = vector.shape_cast %296 : vector<1x1x128xf32> to vector<1x128xf32>
    %298 = vector.broadcast %297 : vector<1x128xf32> to vector<16x128xf32>
    %299 = arith.addf %295, %298 : vector<16x128xf32>
    %300 = arith.addf %299, %270 : vector<16x128xf32>
    %c1_129 = arith.constant 1 : index
    %c0_130 = arith.constant 0 : index
    %c0_131 = arith.constant 0 : index
    %301 = vector.load %arg16[%c1_129, %c0_130, %c0_131] : memref<2x1x128xf32, #tpu.memory_space<vmem>>, vector<1x1x128xf32>
    %302 = vector.shape_cast %301 : vector<1x1x128xf32> to vector<1x128xf32>
    %c1_132 = arith.constant 1 : index
    %c0_133 = arith.constant 0 : index
    %c0_134 = arith.constant 0 : index
    %303 = vector.load %arg17[%c1_132, %c0_133, %c0_134] : memref<2x1x128xf32, #tpu.memory_space<vmem>>, vector<1x1x128xf32>
    %304 = vector.shape_cast %303 : vector<1x1x128xf32> to vector<1x128xf32>
    %305 = vector.broadcast %4 : vector<1x128xf32> to vector<16x128xf32>
    %306 = arith.mulf %300, %305 : vector<16x128xf32>
    %cst_135 = arith.constant dense<0.000000e+00> : vector<16xf32>
    %307 = vector.multi_reduction <add>, %306, %cst_135 [1] : vector<16x128xf32> to vector<16xf32>
    %308 = vector.shape_cast %307 : vector<16xf32> to vector<16x1xf32>
    %cst_136 = arith.constant 3.125000e-02 : f32
    %309 = vector.broadcast %cst_136 : f32 to vector<16x1xf32>
    %310 = arith.mulf %308, %309 : vector<16x1xf32>
    %311 = vector.broadcast %310 : vector<16x1xf32> to vector<16x128xf32>
    %312 = arith.subf %300, %311 : vector<16x128xf32>
    %313 = vector.broadcast %4 : vector<1x128xf32> to vector<16x128xf32>
    %314 = arith.mulf %312, %313 : vector<16x128xf32>
    %315 = arith.mulf %314, %314 : vector<16x128xf32>
    %cst_137 = arith.constant dense<0.000000e+00> : vector<16xf32>
    %316 = vector.multi_reduction <add>, %315, %cst_137 [1] : vector<16x128xf32> to vector<16xf32>
    %317 = vector.shape_cast %316 : vector<16xf32> to vector<16x1xf32>
    %cst_138 = arith.constant 3.125000e-02 : f32
    %318 = vector.broadcast %cst_138 : f32 to vector<16x1xf32>
    %319 = arith.mulf %317, %318 : vector<16x1xf32>
    %cst_139 = arith.constant 9.99999996E-13 : f32
    %320 = vector.broadcast %cst_139 : f32 to vector<16x1xf32>
    %321 = arith.addf %319, %320 : vector<16x1xf32>
    %322 = math.rsqrt %321 : vector<16x1xf32>
    %323 = vector.broadcast %322 : vector<16x1xf32> to vector<16x128xf32>
    %324 = arith.mulf %314, %323 : vector<16x128xf32>
    %325 = vector.broadcast %302 : vector<1x128xf32> to vector<16x128xf32>
    %326 = arith.mulf %324, %325 : vector<16x128xf32>
    %327 = vector.broadcast %304 : vector<1x128xf32> to vector<16x128xf32>
    %328 = arith.addf %326, %327 : vector<16x128xf32>
    %c0_140 = arith.constant 0 : index
    %c0_141 = arith.constant 0 : index
    %329 = vector.load %arg2[%c0_140, %c0_141] : memref<2x16xf32, #tpu.memory_space<vmem>>, vector<2x16xf32>
    %cst_142 = arith.constant dense<0.000000e+00> : vector<2x128xf32>
    %330 = tpu.matmul %329, %328, %cst_142 {dimension_numbers = #tpu.dot_dimension_numbers<[1], [0], [0], [1], [0, 0, 1, 1], [], []>} : vector<2x16xf32>, vector<16x128xf32>, vector<2x128xf32> -> vector<2x128xf32>
    %331 = arith.truncf %330 : vector<2x128xf32> to vector<2x128xbf16>
    %c0_143 = arith.constant 0 : index
    %c0_144 = arith.constant 0 : index
    %332 = vector.load %arg18[%c0_143, %c0_144] : memref<128x128xbf16, #tpu.memory_space<vmem>>, vector<128x128xbf16>
    %cst_145 = arith.constant dense<0.000000e+00> : vector<2x128xf32>
    %333 = tpu.matmul %331, %332, %cst_145 {dimension_numbers = #tpu.dot_dimension_numbers<[1], [0], [0], [1], [0, 0, 1, 1], [], []>} : vector<2x128xbf16>, vector<128x128xbf16>, vector<2x128xf32> -> vector<2x128xf32>
    %c0_146 = arith.constant 0 : index
    %c0_147 = arith.constant 0 : index
    %334 = vector.load %arg19[%c0_146, %c0_147] : memref<1x128xf32, #tpu.memory_space<vmem>>, vector<1x128xf32>
    %335 = vector.broadcast %334 : vector<1x128xf32> to vector<2x128xf32>
    %336 = arith.addf %333, %335 : vector<2x128xf32>
    %337 = math.tanh %336 : vector<2x128xf32>
    %338 = arith.truncf %337 : vector<2x128xf32> to vector<2x128xbf16>
    %c0_148 = arith.constant 0 : index
    %c0_149 = arith.constant 0 : index
    %339 = vector.load %arg20[%c0_148, %c0_149] : memref<128x128xbf16, #tpu.memory_space<vmem>>, vector<128x128xbf16>
    %cst_150 = arith.constant dense<0.000000e+00> : vector<2x128xf32>
    %340 = tpu.matmul %338, %339, %cst_150 {dimension_numbers = #tpu.dot_dimension_numbers<[1], [0], [0], [1], [0, 0, 1, 1], [], []>} : vector<2x128xbf16>, vector<128x128xbf16>, vector<2x128xf32> -> vector<2x128xf32>
    %c0_151 = arith.constant 0 : index
    %c0_152 = arith.constant 0 : index
    %341 = vector.load %arg21[%c0_151, %c0_152] : memref<1x128xf32, #tpu.memory_space<vmem>>, vector<1x128xf32>
    %342 = vector.broadcast %341 : vector<1x128xf32> to vector<2x128xf32>
    %343 = arith.addf %340, %342 : vector<2x128xf32>
    %c0_153 = arith.constant 0 : index
    %c0_154 = arith.constant 0 : index
    %344 = vector.load %arg22[%c0_153, %c0_154] : memref<2x128xf32, #tpu.memory_space<vmem>>, vector<2x128xf32>
    tpu.vector_store %arg22[%c0_153, %c0_154], %343 {strides = array<i32>} : memref<2x128xf32, #tpu.memory_space<vmem>>, vector<2x128xf32>,
    %c39_i32 = arith.constant 39 : i32
    %345 = vector.broadcast %c39_i32 : i32 to vector<1x128xi32>
    %346 = arith.cmpi slt, %0, %345 : vector<1x128xi32>
    %cst_155 = arith.constant -1.000000e+30 : f32
    %347 = vector.shape_cast %346 : vector<1x128xi1> to vector<1x128xi1>
    %348 = vector.broadcast %347 : vector<1x128xi1> to vector<2x128xi1>
    %349 = vector.broadcast %cst_155 : f32 to vector<2x128xf32>
    %350 = arith.select %348, %343, %349 : vector<2x128xi1>, vector<2x128xf32>
    %cst_156 = arith.constant dense<0xFF800000> : vector<2xf32>
    %351 = vector.multi_reduction <maximumf>, %350, %cst_156 [1] : vector<2x128xf32> to vector<2xf32>
    %352 = vector.shape_cast %351 : vector<2xf32> to vector<2x1xf32>
    %353 = vector.broadcast %352 : vector<2x1xf32> to vector<2x128xf32>
    %354 = arith.subf %350, %353 : vector<2x128xf32>
    %355 = math.exp %354 : vector<2x128xf32>
    %cst_157 = arith.constant dense<0.000000e+00> : vector<2xf32>
    %356 = vector.multi_reduction <add>, %355, %cst_157 [1] : vector<2x128xf32> to vector<2xf32>
    %357 = vector.shape_cast %356 : vector<2xf32> to vector<2x1xf32>
    %358 = math.log %357 : vector<2x1xf32>
    %359 = arith.addf %352, %358 : vector<2x1xf32>
    %360 = vector.broadcast %359 : vector<2x1xf32> to vector<2x128xf32>
    %361 = arith.subf %350, %360 : vector<2x128xf32>
    %c0_158 = arith.constant 0 : index
    %c0_159 = arith.constant 0 : index
    %362 = vector.load %arg3[%c0_158, %c0_159] : memref<2x128xf32, #tpu.memory_space<vmem>>, vector<2x128xf32>
    %363 = arith.mulf %362, %361 : vector<2x128xf32>
    %cst_160 = arith.constant dense<0.000000e+00> : vector<2xf32>
    %364 = vector.multi_reduction <add>, %363, %cst_160 [1] : vector<2x128xf32> to vector<2xf32>
    %365 = vector.shape_cast %364 : vector<2xf32> to vector<2x1xf32>
    %cst_161 = arith.constant 0.000000e+00 : f32
    %366 = vector.broadcast %cst_161 : f32 to vector<2x1xf32>
    %367 = arith.subf %366, %365 : vector<2x1xf32>
    %cst_162 = arith.constant dense<0.000000e+00> : vector<1xf32>
    %368 = vector.multi_reduction <add>, %367, %cst_162 [0] : vector<2x1xf32> to vector<1xf32>
    %369 = vector.shape_cast %368 : vector<1xf32> to vector<1x1xf32>
    %cst_163 = arith.constant 5.000000e-01 : f32
    %370 = vector.broadcast %cst_163 : f32 to vector<1x1xf32>
    %371 = arith.mulf %369, %370 : vector<1x1xf32>
    %c0_164 = arith.constant 0 : index
    %c0_165 = arith.constant 0 : index
    %372 = vector.load %arg23[%c0_164, %c0_165] : memref<1x1xf32, #tpu.memory_space<vmem>>, vector<1x1xf32>
    tpu.vector_store %arg23[%c0_164, %c0_165], %371 {strides = array<i32>} : memref<1x1xf32, #tpu.memory_space<vmem>>, vector<1x1xf32>,
    return
  }
}

</mosaic_0001>

<bundles_post_ra>
// kernel: bert_forward.1
= control target key start
LH: loop header
LB: loop body
LE: loop exit
PB: predicated region body
PF: predicated region fallthrough
CT: control target
= control target key end

     0   :  { %s4926_s0 = inlined_call_operand.vmem [shape: f32[16,128], index: 0, kind: input, shape index: {}]   ;;  %s4927_s1 = inlined_call_operand.vmem [shape: f32[16,16], index: 1, kind: input, shape index: {}]   ;;  %s4928_s2 = inlined_call_operand.vmem [shape: f32[2,16], index: 2, kind: input, shape index: {}]   ;;  %s4929_s3 = inlined_call_operand.vmem [shape: f32[2,128], index: 3, kind: input, shape index: {}]   ;;  %s4930_s4 = inlined_call_operand.hbm [shape: f32[1,128], index: 4, kind: input, shape index: {}]   ;;  %s4931_s5 = inlined_call_operand.hbm [shape: f32[1,128], index: 5, kind: input, shape index: {}]   ;;  %s4932_s6 = inlined_call_operand.hbm [shape: bf16[2,128,640], index: 6, kind: input, shape index: {}]   ;;  %s4933_s7 = inlined_call_operand.hbm [shape: f32[2,1,640], index: 7, kind: input, shape index: {}]   ;;  %s4934_s8 = inlined_call_operand.vmem [shape: bf16[2,128,128], index: 8, kind: input, shape index: {}]   ;;  %s4935_s9 = inlined_call_operand.vmem [shape: f32[2,1,128], index: 9, kind: input, shape index: {}]   ;;  %s4936_s10 = inlined_call_operand.hbm [shape: f32[2,1,128], index: 10, kind: input, shape index: {}]   ;;  %s4937_s11 = inlined_call_operand.hbm [shape: f32[2,1,128], index: 11, kind: input, shape index: {}]   ;;  %s4938_s12 = inlined_call_operand.vmem [shape: bf16[2,128,128], index: 12, kind: input, shape index: {}]   ;;  %s4939_s13 = inlined_call_operand.hbm [shape: f32[2,1,128], index: 13, kind: input, shape index: {}]   ;;  %s4940_s14 = inlined_call_operand.hbm [shape: bf16[2,128,128], index: 14, kind: input, shape index: {}]   ;;  %s4941_s15 = inlined_call_operand.hbm [shape: f32[2,1,128], index: 15, kind: input, shape index: {}]   ;;  %s4942_s16 = inlined_call_operand.hbm [shape: f32[2,1,128], index: 16, kind: input, shape index: {}]   ;;  %s4943_s17 = inlined_call_operand.hbm [shape: f32[2,1,128], index: 17, kind: input, shape index: {}]   ;;  %s4944_s18 = inlined_call_operand.vmem [shape: bf16[128,128], index: 18, kind: input, shape index: {}]   ;;  %s4945_s19 = inlined_call_operand.hbm [shape: f32[1,128], index: 19, kind: input, shape index: {}]   ;;  %s4946_s20 = inlined_call_operand.hbm [shape: bf16[128,128], index: 20, kind: input, shape index: {}]   ;;  %s4947_s21 = inlined_call_operand.hbm [shape: f32[1,128], index: 21, kind: input, shape index: {}]   ;;  %s4948_s22 = inlined_call_operand.hbm [shape: f32[2,128], index: 22, kind: output, shape index: {0}]   ;;  %s4949_s23 = inlined_call_operand.hbm [shape: f32[1,1], index: 23, kind: output, shape index: {1}]  }
   0x1   :  { %4958 = sst [smem:[#allocation38_spill]] %s4926_s0 }
   0x2   :  { %4959 = sst [smem:[#allocation39_spill]] %s4927_s1 }
   0x3   :  { %4960 = sst [smem:[#allocation40_spill]] %s4928_s2 }
   0x4   :  { %4961 = sst [smem:[#allocation41_spill]] %s4929_s3 }
   0x5   :  { %4962 = sst [smem:[#allocation42_spill]] %s4930_s4 }
   0x6   :  { %4963 = sst [smem:[#allocation43_spill]] %s4931_s5 }
   0x7   :  { %4964 = sst [smem:[#allocation44_spill]] %s4932_s6 }
   0x8   :  { %4965 = sst [smem:[#allocation45_spill]] %s4933_s7 }
   0x9   :  { %4966 = sst [smem:[#allocation46_spill]] %s4948_s22 }
   0xa   :  { %4967 = sst [smem:[#allocation47_spill]] %s4949_s23 }
   0xb   :  { %29 = vsyncpa [#allocation3], 0 }
   0xc   :  { %30 = vsyncpa [#allocation6], 0 }
   0xd   :  { %31 = vsyncpa [#allocation9], 0 }
   0xe   :  { %32 = vsyncpa [#allocation12], 0 }
   0xf   :  { %33 = vsyncpa [#allocation15], 0 }
  0x10   :  { %34 = vsyncpa [#allocation18], 0 }
  0x11   :  { %35 = vsyncpa [#allocation21], 0 }
  0x12   :  { %36 = vsyncpa [#allocation24], 0 }
  0x13   :  { %37 = vsyncpa [#allocation4], 0 }
  0x14   :  { %38 = vsyncpa [#allocation27], 0  ;;  %s4090_s4 = smov [#allocation5]   ;;  %s4091_s24 = smov [#allocation8]  }
  0x15   :  { %s63_s30 = sshll.u32 %s4090_s4, 4  ;;  %s84_s25 = sshll.u32 %s4091_s24, 4  ;;  %s64_s30 = int_to_ptr.vmem [resolvable:$true] %s63_s30  ;;  %s4238_s25 = int_to_ptr.vmem [resolvable:$true] %s84_s25 }
  0x16   :  { %s4968_s26 = sld [smem:[#allocation43_spill]] }
  0x1c   :  { %s3718_s2 = scalar_lea.hbm %s4968_s26, 16 }
  0x1d   :  { %p3719_p0 = scmp.ne.s32.totalorder %s4968_s26, %s3718_s2  ;;  %p3722_p1 = scmp.lt.u32.totalorder %s3718_s2, %s4968_s26 }
  0x1f   :  { %p3724_p2 = pnand %p3722_p1, %p3719_p0 }
  0x21   :  { %3727 = shalt.err (!%p3724_p2)
}
  0x22   :  { %s3728_s29 = scalar_lea.vmem %s64_s30, 16  ;;  %s3732_s3 = scalar_lea.vmem %s64_s30, 32 }
  0x23   :  { %p3729_p3 = scmp.ne.s32.totalorder %s64_s30, %s3728_s29  ;;  %p3733_p4 = scmp.lt.s32.totalorder %s64_s30, %s64_s30 }
  0x24   :  { %p3734_p5 = scmp.lt.s32.totalorder %s3732_s3, %s3728_s29 }
  0x26   :  { %p3735_p6 = por %p3734_p5, %p3733_p4 }
  0x28   :  { %p3736_p7 = pnand %p3735_p6, %p3729_p3 }
  0x2a   :  { %3739 = shalt.err (!%p3736_p7)
}
  0x2b   :  { %66 = dma.hbm_to_vmem [thread:$0]  %s4968_s26, 16, %s64_s30, [#allocation6]  }
  0x2c   :  { %s4969_s1 = sld [smem:[#allocation45_spill]] }
  0x32   :  { %s3740_s6 = scalar_lea.hbm %s4969_s1, 160 }
  0x33   :  { %p3741_p8 = scmp.ne.s32.totalorder %s4969_s1, %s3740_s6  ;;  %p3744_p9 = scmp.lt.u32.totalorder %s3740_s6, %s4969_s1 }
  0x35   :  { %p3746_p10 = pnand %p3744_p9, %p3741_p8 }
  0x37   :  { %3749 = shalt.err (!%p3746_p10)
}
  0x38   :  { %s3750_s29 = scalar_lea.vmem %s4238_s25, 160  ;;  %p3755_p12 = scmp.lt.s32.totalorder %s4238_s25, %s4238_s25 }
  0x39   :  { %p3751_p11 = scmp.ne.s32.totalorder %s4238_s25, %s3750_s29  ;;  %p3756_p13 = scmp.lt.s32.totalorder %s3750_s29, %s3750_s29 }
  0x3b   :  { %p3757_p0 = por %p3756_p13, %p3755_p12 }
  0x3d   :  { %p3758_p1 = pnand %p3757_p0, %p3751_p11 }
  0x3f   :  { %3761 = shalt.err (!%p3758_p1)
}
  0x40   :  { %s4092_s30 = smov 80   ;;  %s4093_s26 = smov 5  }
  0x41   :  { %90 = dma.hbm_to_vmem [thread:$0]  %s4969_s1, 160, %s4238_s25, [#allocation9], %s4092_s30, %s4092_s30, %s4093_s26  }
  0x42   :  { %s4094_s4 = smov [#allocation11]   ;;  %s4095_s5 = smov [#allocation14]  }
  0x43   :  { %s112_s24 = sshll.u32 %s4094_s4, 4  ;;  %s138_s6 = sshll.u32 %s4095_s5, 4  ;;  %s113_s24 = int_to_ptr.vmem [resolvable:$true] %s112_s24  ;;  %s4269_s6 = int_to_ptr.vmem [resolvable:$true] %s138_s6 }
  0x44   :  { %s3762_s7 = scalar_lea.hbm %s4937_s11, 32 }
  0x45   :  { %p3763_p2 = scmp.ne.s32.totalorder %s4937_s11, %s3762_s7  ;;  %p3766_p3 = scmp.lt.u32.totalorder %s3762_s7, %s4937_s11 }
  0x47   :  { %p3768_p4 = pnand %p3766_p3, %p3763_p2 }
  0x49   :  { %3771 = shalt.err (!%p3768_p4)
}
  0x4a   :  { %s3772_s25 = scalar_lea.vmem %s113_s24, 32  ;;  %p3777_p6 = scmp.lt.s32.totalorder %s113_s24, %s113_s24 }
  0x4b   :  { %p3773_p5 = scmp.ne.s32.totalorder %s113_s24, %s3772_s25  ;;  %p3778_p7 = scmp.lt.s32.totalorder %s3772_s25, %s3772_s25 }
  0x4d   :  { %p3779_p8 = por %p3778_p7, %p3777_p6 }
  0x4f   :  { %p3780_p9 = pnand %p3779_p8, %p3773_p5 }
  0x51   :  { %3783 = shalt.err (!%p3780_p9)
}
  0x52   :  { %s4096_s1 = smov 16   ;;  %s4097_s30 = smov 1  }
  0x53   :  { %118 = dma.hbm_to_vmem [thread:$0]  %s4937_s11, 32, %s113_s24, [#allocation12], %s4096_s1, %s4096_s1, %s4097_s30  }
  0x54   :  { %s3784_s0 = scalar_lea.hbm %s4940_s14, 2048 }
  0x55   :  { %p3785_p10 = scmp.ne.s32.totalorder %s4940_s14, %s3784_s0  ;;  %p3788_p11 = scmp.lt.u32.totalorder %s3784_s0, %s4940_s14 }
  0x57   :  { %p3790_p12 = pnand %p3788_p11, %p3785_p10 }
  0x59   :  { %3793 = shalt.err (!%p3790_p12)
}
  0x5a   :  { %s3794_s7 = scalar_lea.vmem %s4269_s6, 2048  ;;  %p3799_p0 = scmp.lt.s32.totalorder %s4269_s6, %s4269_s6 }
  0x5b   :  { %p3795_p13 = scmp.ne.s32.totalorder %s4269_s6, %s3794_s7  ;;  %p3800_p1 = scmp.lt.s32.totalorder %s3794_s7, %s3794_s7 }
  0x5d   :  { %p3801_p2 = por %p3800_p1, %p3799_p0 }
  0x5f   :  { %p3802_p3 = pnand %p3801_p2, %p3795_p13 }
  0x61   :  { %3805 = shalt.err (!%p3802_p3)
}
  0x62   :  { %s4098_s11 = smov 64   ;;  %s4099_s24 = smov 4  }
  0x63   :  { %144 = dma.hbm_to_vmem [thread:$0]  %s4940_s14, 2048, %s4269_s6, [#allocation15], %s4098_s11, %s4098_s11, %s4099_s24  }
  0x64   :  { %s4100_s25 = smov [#allocation17]   ;;  %s4101_s3 = smov [#allocation20]  }
  0x65   :  { %s162_s26 = sshll.u32 %s4100_s25, 4  ;;  %s189_s22 = sshll.u32 %s4101_s3, 4  ;;  %s163_s26 = int_to_ptr.vmem [resolvable:$true] %s162_s26  ;;  %s190_s22 = int_to_ptr.vmem [resolvable:$true] %s189_s22 }
  0x66   :  { %s3806_s4 = scalar_lea.hbm %s4942_s16, 32 }
  0x67   :  { %p3807_p4 = scmp.ne.s32.totalorder %s4942_s16, %s3806_s4  ;;  %p3810_p5 = scmp.lt.u32.totalorder %s3806_s4, %s4942_s16 }
  0x69   :  { %p3812_p6 = pnand %p3810_p5, %p3807_p4 }
  0x6b   :  { %3815 = shalt.err (!%p3812_p6)
}
  0x6c   :  { %s3816_s14 = scalar_lea.vmem %s163_s26, 32  ;;  %p3821_p8 = scmp.lt.s32.totalorder %s163_s26, %s163_s26 }
  0x6d   :  { %p3817_p7 = scmp.ne.s32.totalorder %s163_s26, %s3816_s14  ;;  %p3822_p9 = scmp.lt.s32.totalorder %s3816_s14, %s3816_s14 }
  0x6f   :  { %p3823_p10 = por %p3822_p9, %p3821_p8 }
  0x71   :  { %p3824_p11 = pnand %p3823_p10, %p3817_p7 }
  0x73   :  { %3827 = shalt.err (!%p3824_p11)
}
  0x74   :  { %168 = dma.hbm_to_vmem [thread:$0]  %s4942_s16, 32, %s163_s26, [#allocation18], %s4096_s1, %s4096_s1, %s4097_s30  }
  0x75   :  { %s3828_s3 = scalar_lea.hbm %s4945_s19, 16 }
  0x76   :  { %p3829_p12 = scmp.ne.s32.totalorder %s4945_s19, %s3828_s3  ;;  %p3832_p13 = scmp.lt.u32.totalorder %s3828_s3, %s4945_s19 }
  0x78   :  { %p3834_p0 = pnand %p3832_p13, %p3829_p12 }
  0x7a   :  { %3837 = shalt.err (!%p3834_p0)
}
  0x7b   :  { %s3838_s27 = scalar_lea.vmem %s190_s22, 16  ;;  %s3842_s2 = scalar_lea.vmem %s190_s22, 32 }
  0x7c   :  { %p3839_p1 = scmp.ne.s32.totalorder %s190_s22, %s3838_s27  ;;  %p3843_p2 = scmp.lt.s32.totalorder %s190_s22, %s190_s22 }
  0x7d   :  { %p3844_p3 = scmp.lt.s32.totalorder %s3842_s2, %s3838_s27 }
  0x7f   :  { %p3845_p4 = por %p3844_p3, %p3843_p2 }
  0x81   :  { %p3846_p5 = pnand %p3845_p4, %p3839_p1 }
  0x83   :  { %3849 = shalt.err (!%p3846_p5)
}
  0x84   :  { %192 = dma.hbm_to_vmem [thread:$0]  %s4945_s19, 16, %s190_s22, [#allocation21]  }
  0x85   :  { %s4102_s7 = smov [#allocation2]   ;;  %s4103_s6 = smov [#allocation7]  }
  0x86   :  { %s53_s14 = sshll.u32 %s4102_s7, 4  ;;  %s72_s28 = sshll.u32 %s4103_s6, 4  ;;  %s54_s14 = int_to_ptr.vmem [resolvable:$true] %s53_s14  ;;  %s4333_s28 = int_to_ptr.vmem [resolvable:$true] %s72_s28 }
  0x87   :  { %s4970_s3 = sld [smem:[#allocation42_spill]] }
  0x8d   :  { %s3850_s23 = scalar_lea.hbm %s4970_s3, 16 }
  0x8e   :  { %p3851_p6 = scmp.ne.s32.totalorder %s4970_s3, %s3850_s23  ;;  %p3854_p7 = scmp.lt.u32.totalorder %s3850_s23, %s4970_s3 }
  0x90   :  { %p3856_p8 = pnand %p3854_p7, %p3851_p6 }
  0x92   :  { %3859 = shalt.err (!%p3856_p8)
}
  0x93   :  { %s3860_s19 = scalar_lea.vmem %s54_s14, 16  ;;  %s3864_s22 = scalar_lea.vmem %s54_s14, 32 }
  0x94   :  { %p3861_p9 = scmp.ne.s32.totalorder %s54_s14, %s3860_s19  ;;  %p3865_p10 = scmp.lt.s32.totalorder %s54_s14, %s54_s14 }
  0x95   :  { %p3866_p11 = scmp.lt.s32.totalorder %s3864_s22, %s3860_s19 }
  0x97   :  { %p3867_p12 = por %p3866_p11, %p3865_p10 }
  0x99   :  { %p3868_p13 = pnand %p3867_p12, %p3861_p9 }
  0x9b   :  { %3871 = shalt.err (!%p3868_p13)
}
  0x9c   :  { %56 = dma.hbm_to_vmem [thread:$0]  %s4970_s3, 16, %s54_s14, [#allocation3]  }
  0x9d   :  { %s4971_s6 = sld [smem:[#allocation44_spill]] }
  0xa3   :  { %s3872_s29 = scalar_lea.hbm %s4971_s6, 10240 }
  0xa4   :  { %p3873_p0 = scmp.ne.s32.totalorder %s4971_s6, %s3872_s29  ;;  %p3876_p1 = scmp.lt.u32.totalorder %s3872_s29, %s4971_s6 }
  0xa6   :  { %p3878_p2 = pnand %p3876_p1, %p3873_p0 }
  0xa8   :  { %3881 = shalt.err (!%p3878_p2)
}
  0xa9   :  { %s3882_s5 = scalar_lea.vmem %s4333_s28, 10240  ;;  %p3887_p4 = scmp.lt.s32.totalorder %s4333_s28, %s4333_s28 }
  0xaa   :  { %p3883_p3 = scmp.ne.s32.totalorder %s4333_s28, %s3882_s5  ;;  %p3888_p5 = scmp.lt.s32.totalorder %s3882_s5, %s3882_s5 }
  0xac   :  { %p3889_p6 = por %p3888_p5, %p3887_p4 }
  0xae   :  { %p3890_p7 = pnand %p3889_p6, %p3883_p3 }
  0xb0   :  { %3893 = shalt.err (!%p3890_p7)
}
  0xb1   :  { %s4104_s14 = smov 320   ;;  %s4105_s3 = smov 20  }
  0xb2   :  { %78 = dma.hbm_to_vmem [thread:$0]  %s4971_s6, 10240, %s4333_s28, [#allocation6], %s4104_s14, %s4104_s14, %s4105_s3  }
  0xb3   :  { %s4106_s22 = smov [#allocation10]   ;;  %s4107_s16 = smov [#allocation13]  }
  0xb4   :  { %s100_s2 = sshll.u32 %s4106_s22, 4  ;;  %s126_s26 = sshll.u32 %s4107_s16, 4  ;;  %s101_s2 = int_to_ptr.vmem [resolvable:$true] %s100_s2  ;;  %s4364_s26 = int_to_ptr.vmem [resolvable:$true] %s126_s26 }
  0xb5   :  { %s3894_s25 = scalar_lea.hbm %s4936_s10, 32 }
  0xb6   :  { %p3895_p8 = scmp.ne.s32.totalorder %s4936_s10, %s3894_s25  ;;  %p3898_p9 = scmp.lt.u32.totalorder %s3894_s25, %s4936_s10 }
  0xb8   :  { %p3900_p10 = pnand %p3898_p9, %p3895_p8 }
  0xba   :  { %3903 = shalt.err (!%p3900_p10)
}
  0xbb   :  { %s3904_s28 = scalar_lea.vmem %s101_s2, 32  ;;  %p3909_p12 = scmp.lt.s32.totalorder %s101_s2, %s101_s2 }
  0xbc   :  { %p3905_p11 = scmp.ne.s32.totalorder %s101_s2, %s3904_s28  ;;  %p3910_p13 = scmp.lt.s32.totalorder %s3904_s28, %s3904_s28 }
  0xbe   :  { %p3911_p0 = por %p3910_p13, %p3909_p12 }
  0xc0   :  { %p3912_p1 = pnand %p3911_p0, %p3905_p11 }
  0xc2   :  { %3915 = shalt.err (!%p3912_p1)
}
  0xc3   :  { %106 = dma.hbm_to_vmem [thread:$0]  %s4936_s10, 32, %s101_s2, [#allocation9], %s4096_s1, %s4096_s1, %s4097_s30  }
  0xc4   :  { %s3916_s19 = scalar_lea.hbm %s4939_s13, 32 }
  0xc5   :  { %p3917_p2 = scmp.ne.s32.totalorder %s4939_s13, %s3916_s19  ;;  %p3920_p3 = scmp.lt.u32.totalorder %s3916_s19, %s4939_s13 }
  0xc7   :  { %p3922_p4 = pnand %p3920_p3, %p3917_p2 }
  0xc9   :  { %3925 = shalt.err (!%p3922_p4)
}
  0xca   :  { %s3926_s25 = scalar_lea.vmem %s4364_s26, 32  ;;  %p3931_p6 = scmp.lt.s32.totalorder %s4364_s26, %s4364_s26 }
  0xcb   :  { %p3927_p5 = scmp.ne.s32.totalorder %s4364_s26, %s3926_s25  ;;  %p3932_p7 = scmp.lt.s32.totalorder %s3926_s25, %s3926_s25 }
  0xcd   :  { %p3933_p8 = por %p3932_p7, %p3931_p6 }
  0xcf   :  { %p3934_p9 = pnand %p3933_p8, %p3927_p5 }
  0xd1   :  { %3937 = shalt.err (!%p3934_p9)
}
  0xd2   :  { %132 = dma.hbm_to_vmem [thread:$0]  %s4939_s13, 32, %s4364_s26, [#allocation12], %s4096_s1, %s4096_s1, %s4097_s30  }
  0xd3   :  { %s4108_s23 = smov [#allocation16]   ;;  %s4109_s4 = smov [#allocation19]  }
  0xd4   :  { %s150_s0 = sshll.u32 %s4108_s23, 4  ;;  %s174_s5 = sshll.u32 %s4109_s4, 4  ;;  %s151_s0 = int_to_ptr.vmem [resolvable:$true] %s150_s0  ;;  %s4401_s5 = int_to_ptr.vmem [resolvable:$true] %s174_s5 }
  0xd5   :  { %s3938_s14 = scalar_lea.hbm %s4941_s15, 32 }
  0xd6   :  { %p3939_p10 = scmp.ne.s32.totalorder %s4941_s15, %s3938_s14  ;;  %p3942_p11 = scmp.lt.u32.totalorder %s3938_s14, %s4941_s15 }
  0xd8   :  { %p3944_p12 = pnand %p3942_p11, %p3939_p10 }
  0xda   :  { %3947 = shalt.err (!%p3944_p12)
}
  0xdb   :  { %s3948_s13 = scalar_lea.vmem %s151_s0, 32  ;;  %p3953_p0 = scmp.lt.s32.totalorder %s151_s0, %s151_s0 }
  0xdc   :  { %p3949_p13 = scmp.ne.s32.totalorder %s151_s0, %s3948_s13  ;;  %p3954_p1 = scmp.lt.s32.totalorder %s3948_s13, %s3948_s13 }
  0xde   :  { %p3955_p2 = por %p3954_p1, %p3953_p0 }
  0xe0   :  { %p3956_p3 = pnand %p3955_p2, %p3949_p13 }
  0xe2   :  { %3959 = shalt.err (!%p3956_p3)
}
  0xe3   :  { %156 = dma.hbm_to_vmem [thread:$0]  %s4941_s15, 32, %s151_s0, [#allocation15], %s4096_s1, %s4096_s1, %s4097_s30  }
  0xe4   :  { %s3960_s25 = scalar_lea.hbm %s4943_s17, 32 }
  0xe5   :  { %p3961_p4 = scmp.ne.s32.totalorder %s4943_s17, %s3960_s25  ;;  %p3964_p5 = scmp.lt.u32.totalorder %s3960_s25, %s4943_s17 }
  0xe7   :  { %p3966_p6 = pnand %p3964_p5, %p3961_p4 }
  0xe9   :  { %3969 = shalt.err (!%p3966_p6)
}
  0xea   :  { %s3970_s28 = scalar_lea.vmem %s4401_s5, 32  ;;  %p3975_p8 = scmp.lt.s32.totalorder %s4401_s5, %s4401_s5 }
  0xeb   :  { %p3971_p7 = scmp.ne.s32.totalorder %s4401_s5, %s3970_s28  ;;  %p3976_p9 = scmp.lt.s32.totalorder %s3970_s28, %s3970_s28 }
  0xed   :  { %p3977_p10 = por %p3976_p9, %p3975_p8 }
  0xef   :  { %p3978_p11 = pnand %p3977_p10, %p3971_p7 }
  0xf1   :  { %3981 = shalt.err (!%p3978_p11)
}
  0xf2   :  { %180 = dma.hbm_to_vmem [thread:$0]  %s4943_s17, 32, %s4401_s5, [#allocation18], %s4096_s1, %s4096_s1, %s4097_s30  }
  0xf3   :  { %s4110_s6 = smov [#allocation22]   ;;  %s4111_s3 = smov [#allocation23]  }
  0xf4   :  { %s198_s14 = sshll.u32 %s4110_s6, 4  ;;  %s211_s27 = sshll.u32 %s4111_s3, 4  ;;  %s199_s14 = int_to_ptr.vmem [resolvable:$true] %s198_s14  ;;  %s212_s27 = int_to_ptr.vmem [resolvable:$true] %s211_s27 }
  0xf5   :  { %s3982_s13 = scalar_lea.hbm %s4946_s20, 1024 }
  0xf6   :  { %p3983_p12 = scmp.ne.s32.totalorder %s4946_s20, %s3982_s13  ;;  %p3986_p13 = scmp.lt.u32.totalorder %s3982_s13, %s4946_s20 }
  0xf8   :  { %p3988_p0 = pnand %p3986_p13, %p3983_p12 }
  0xfa   :  { %3991 = shalt.err (!%p3988_p0)
}
  0xfb   :  { %s3992_s17 = scalar_lea.vmem %s199_s14, 1024  ;;  %p3997_p2 = scmp.lt.s32.totalorder %s199_s14, %s199_s14 }
  0xfc   :  { %p3993_p1 = scmp.ne.s32.totalorder %s199_s14, %s3992_s17  ;;  %p3998_p3 = scmp.lt.s32.totalorder %s3992_s17, %s3992_s17 }
  0xfe   :  { %p3999_p4 = por %p3998_p3, %p3997_p2 }
 0x100   :  { %p4000_p5 = pnand %p3999_p4, %p3993_p1 }
 0x102   :  { %4003 = shalt.err (!%p4000_p5)
}
 0x103   :  { %204 = dma.hbm_to_vmem [thread:$0]  %s4946_s20, 1024, %s199_s14, [#allocation21], %s4098_s11, %s4098_s11, %s4099_s24  }
 0x104   :  { %s4004_s10 = scalar_lea.hbm %s4947_s21, 16 }
 0x105   :  { %p4005_p6 = scmp.ne.s32.totalorder %s4947_s21, %s4004_s10  ;;  %p4008_p7 = scmp.lt.u32.totalorder %s4004_s10, %s4947_s21 }
 0x107   :  { %p4010_p8 = pnand %p4008_p7, %p4005_p6 }
 0x109   :  { %4013 = shalt.err (!%p4010_p8)
}
 0x10a   :  { %s4014_s15 = scalar_lea.vmem %s212_s27, 16  ;;  %s4018_s0 = scalar_lea.vmem %s212_s27, 32 }
 0x10b   :  { %p4015_p9 = scmp.ne.s32.totalorder %s212_s27, %s4014_s15  ;;  %p4019_p10 = scmp.lt.s32.totalorder %s212_s27, %s212_s27 }
 0x10c   :  { %p4020_p11 = scmp.lt.s32.totalorder %s4018_s0, %s4014_s15 }
 0x10e   :  { %p4021_p12 = por %p4020_p11, %p4019_p10 }
 0x110   :  { %p4022_p13 = pnand %p4021_p12, %p4015_p9 }
 0x112   :  { %4025 = shalt.err (!%p4022_p13)
}
 0x113   :  { %214 = dma.hbm_to_vmem [thread:$0]  %s4947_s21, 16, %s212_s27, [#allocation24]  }
 0x114   :  { %4070 = dma.done.wait [#allocation3], 16  }
 0x115   :  { %4071 = vsyncadd [#allocation3], 4294967280 }
 0x116   :  { %4072 = dma.done.wait [#allocation6], 10256  }
 0x117   :  { %4073 = vsyncadd [#allocation6], 4294957040 }
 0x118   :  { %4074 = dma.done.wait [#allocation9], 192  }
 0x119   :  { %4075 = vsyncadd [#allocation9], 4294967104 }
 0x11a   :  { %4076 = dma.done.wait [#allocation12], 64  }
 0x11b   :  { %4077 = vsyncadd [#allocation12], 4294967232 }
 0x11c   :  { %4078 = dma.done.wait [#allocation15], 2080  }
 0x11d   :  { %4079 = vsyncadd [#allocation15], 4294965216 }
 0x11e   :  { %4080 = dma.done.wait [#allocation18], 64  }
 0x11f   :  { %4081 = vsyncadd [#allocation18], 4294967232 }
 0x120   :  { %4082 = dma.done.wait [#allocation21], 1040  }
 0x121   :  { %4083 = vsyncadd [#allocation21], 4294966256 }
 0x122   :  { %4084 = dma.done.wait [#allocation24], 16  }
 0x123   :  { %4085 = vsyncadd [#allocation24], 4294967280  ;;  %v258_v0 = vlaneseq  ;;  %v4112_v2 = vmov 0.0   ;;  %s4972_s6 = sld [smem:[#allocation38_spill]]  ;;  %v3476_v8 = vld [vmem:[#allocation7 + $0x4] ss:$20 sps:$4 sm:$0xff]  }
 0x124   :  { %v3478_v9 = vld [vmem:[#allocation7] ss:$20 sps:$4 sm:$0xff]   ;;  %v3481_v11 = vld [vmem:[#allocation7 + $0x8] ss:$20 sps:$4 sm:$0xff]   ;;  %595 = vmatprep.subr.bf16.mxu0 %v3476_v8  ;;  %v3487_v25 = vld [vmem:[#allocation7 + $0x30] ss:$20 sps:$4 sm:$0xff]  }
 0x125   :  { %v4466_v1 = vand.u32 127, %v258_v0  ;;  %v3479_v10 = vld [vmem:[#allocation7 + $0xc] ss:$20 sps:$4 sm:$0xff]   ;;  %v3484_v13 = vld [vmem:[#allocation7 + $0x28] ss:$20 sps:$4 sm:$0xff]   ;;  %596 = vmatpush1.bf16.msra.mxu0 %v3478_v9  ;;  %v4113_v44 = vmov 0  }
 0x126   :  { %v3482_v12 = vld [vmem:[#allocation7 + $0x2c] ss:$20 sps:$4 sm:$0xff]   ;;  %638 = vmatprep.subr.bf16.mxu1 %v3479_v10  ;;  %v3485_v14 = vld [vmem:[#allocation7 + $0x34] ss:$20 sps:$4 sm:$0xff]   ;;  %v3490_v27 = vld [vmem:[#allocation7 + $0x50] ss:$20 sps:$4 sm:$0xff]   ;;  %627 = vmatprep.mubr.bf16.mxu0 %v4113_v44 }
 0x127   :  { %vm260_vm0 = vcmp.lt.s32.totalorder %v4466_v1, 32  ;;  %639 = vmatpush1.bf16.msra.mxu1 %v3481_v11  ;;  %597 = vmatprep.subr.bf16.mxu0 %v3482_v12  ;;  %v3488_v26 = vld [vmem:[#allocation7 + $0x54] ss:$20 sps:$4 sm:$0xff]   ;;  %v3491_v28 = vld [vmem:[#allocation7 + $0x5c] ss:$20 sps:$4 sm:$0xff]   ;;  %vm4114_vm1 = vmmov 0  }
 0x128   :  { %v4470_v3 = vsel %vm260_vm0, 1.0, %v4112_v2  ;;  %640 = vmatprep.subr.bf16.mxu1 %v3485_v14  ;;  %v3493_v29 = vld [vmem:[#allocation7 + $0x58] ss:$20 sps:$4 sm:$0xff]   ;;  %v3494_v30 = vld [vmem:[#allocation7 + $0x7c] ss:$20 sps:$4 sm:$0xff]   ;;  %670 = vmatprep.mubr.bf16.mxu1 %v4113_v44  ;;  %s4973_s22 = sld [smem:[#allocation39_spill]] }
 0x129   :  { %v265_v4 = vld [vmem:[%s4972_s6] sm:$0xff]  ;;  %v266_v5 = vld [vmem:[%s4972_s6 + $0x8] sm:$0xff]  ;;  %598 = vmatpush1.bf16.msra.mxu0 %v3484_v13  ;;  %v3496_v31 = vld [vmem:[#allocation7 + $0x78] ss:$20 sps:$4 sm:$0xff]   ;;  %vm770_vm2 = vcmask 130048   ;;  %s4974_s15 = sld [smem:[#allocation40_spill]] }
 0x12a   :  { %v269_v6 = vmul.f32 %v4470_v3, %v265_v4  ;;  %v270_v7 = vmul.f32 %v4470_v3, %v266_v5  ;;  %599 = vmatprep.subr.bf16.mxu0 %v3488_v26  ;;  %v3497_v32 = vld [vmem:[#allocation7 + $0x84] ss:$20 sps:$4 sm:$0xff]   ;;  %v3499_v33 = vld [vmem:[#allocation7 + $0x80] ss:$20 sps:$4 sm:$0xff]   ;;  %v3505_v37 = vld [vmem:[#allocation7 + $0xa8] ss:$20 sps:$4 sm:$0xff]  }
 0x12b   :  { %641 = vmatpush1.bf16.msra.mxu1 %v3487_v25  ;;  %v3500_v34 = vld [vmem:[#allocation7 + $0xa4] ss:$20 sps:$4 sm:$0xff]   ;;  %v3502_v35 = vld [vmem:[#allocation7 + $0xa0] ss:$20 sps:$4 sm:$0xff]   ;;  %v3508_v40 = vld [vmem:[#allocation7 + $0xc8] ss:$20 sps:$4 sm:$0xff]  }
 0x12c   :  { %271 = vadd.xlane.f32.xlu0 %v269_v6  ;;  %642 = vmatprep.subr.bf16.mxu1 %v3491_v28  ;;  %v3503_v36 = vld [vmem:[#allocation7 + $0xac] ss:$20 sps:$4 sm:$0xff]   ;;  %v3509_v39 = vld [vmem:[#allocation7 + $0xd4] ss:$20 sps:$4 sm:$0xff]   ;;  %v3511_v41 = vld [vmem:[#allocation7 + $0xd0] ss:$20 sps:$4 sm:$0xff]  }
 0x12d   :  { %600 = vmatpush1.bf16.msra.mxu0 %v3490_v27  ;;  %v3506_v38 = vld [vmem:[#allocation7 + $0xcc] ss:$20 sps:$4 sm:$0xff]   ;;  %v3512_v42 = vld [vmem:[#allocation7 + $0xf4] ss:$20 sps:$4 sm:$0xff]   ;;  %v3515_v43 = vld [vmem:[#allocation7 + $0xfc] ss:$20 sps:$4 sm:$0xff]  }
 0x12e   :  { %601 = vmatprep.subr.bf16.mxu0 %v3494_v30  ;;  %v3514_v45 = vld [vmem:[#allocation7 + $0xf0] ss:$20 sps:$4 sm:$0xff]   ;;  %v3517_v46 = vld [vmem:[#allocation7 + $0xf8] ss:$20 sps:$4 sm:$0xff]   ;;  %v3523_v50 = vld [vmem:[#allocation7 + $0x120] ss:$20 sps:$4 sm:$0xff]  }
 0x12f   :  { %643 = vmatpush1.bf16.msra.mxu1 %v3493_v29  ;;  %v3518_v47 = vld [vmem:[#allocation7 + $0x11c] ss:$20 sps:$4 sm:$0xff]   ;;  %v3521_v48 = vld [vmem:[#allocation7 + $0x124] ss:$20 sps:$4 sm:$0xff]   ;;  %v3526_v10 = vld [vmem:[#allocation7 + $0x60] ss:$20 sps:$4 sm:$0xff]  }
 0x130   :  { %273 = vadd.xlane.f32.xlu0 %v270_v7  ;;  %644 = vmatprep.subr.bf16.mxu1 %v3497_v32  ;;  %v3520_v49 = vld [vmem:[#allocation7 + $0x118] ss:$20 sps:$4 sm:$0xff]   ;;  %v2873_v59 = vld [vmem:[#allocation2] ss:$0 sm:$0xff]  ;;  %v2874_v63 = vld [vmem:[#allocation5] ss:$0 sm:$0xff] }
 0x131   :  { %602 = vmatpush1.bf16.msra.mxu0 %v3496_v31  ;;  %v3524_v7 = vld [vmem:[#allocation7 + $0x10] ss:$20 sps:$4 sm:$0xff]   ;;  %v3525_v9 = vld [vmem:[#allocation7 + $0x38] ss:$20 sps:$4 sm:$0xff]   ;;  %v3527_v11 = vld [vmem:[#allocation7 + $0x88] ss:$20 sps:$4 sm:$0xff]  }
 0x132   :  { %603 = vmatprep.subr.bf16.mxu0 %v3500_v34  ;;  %v3528_v12 = vld [vmem:[#allocation7 + $0xb0] ss:$20 sps:$4 sm:$0xff]   ;;  %v3529_v13 = vld [vmem:[#allocation7 + $0xd8] ss:$20 sps:$4 sm:$0xff]   ;;  %v3530_v14 = vld [vmem:[#allocation7 + $0x100] ss:$20 sps:$4 sm:$0xff]  }
 0x133   :  { %645 = vmatpush1.bf16.msra.mxu1 %v3499_v33  ;;  %vm2802_vm3 = vcmp.lt.s32.totalorder %v4466_v1, 39  ;;  %vm2806_vm4 = vcmask 1041408   ;;  %s4975_s29 = sld [smem:[#allocation41_spill]]  ;;  %s4116_s17 = smov [#allocation25]  }
 0x134   :  { %646 = vmatprep.subr.bf16.mxu1 %v3503_v36  ;;  %s2842_s1 = sshll.u32 %s4116_s17, 4  ;;  %s2843_s1 = int_to_ptr.vmem [resolvable:$true] %s2842_s1 }
 0x135   :  { %604 = vmatpush1.bf16.msra.mxu0 %v3502_v35  ;;  %s4026_s30 = scalar_lea.vmem %s2843_s1, 32  ;;  %p4031_p1 = scmp.lt.s32.totalorder %s2843_s1, %s2843_s1 }
 0x136   :  { %605 = vmatprep.subr.bf16.mxu0 %v3506_v38  ;;  %p4027_p0 = scmp.ne.s32.totalorder %s2843_s1, %s4026_s30  ;;  %p4032_p2 = scmp.lt.s32.totalorder %s4026_s30, %s4026_s30 }
 0x137   :  { %647 = vmatpush1.bf16.msra.mxu1 %v3505_v37 }
 0x138   :  { %648 = vmatprep.subr.bf16.mxu1 %v3509_v39  ;;  %p4033_p3 = por %p4032_p2, %p4031_p1 }
 0x139   :  { %606 = vmatpush1.bf16.msra.mxu0 %v3508_v40 }
 0x13a   :  { %607 = vmatprep.subr.bf16.mxu0 %v3512_v42  ;;  %p4034_p4 = pnand %p4033_p3, %p4027_p0 }
 0x13b   :  { %649 = vmatpush1.bf16.msra.mxu1 %v3511_v41 }
 0x13c   :  { %650 = vmatprep.subr.bf16.mxu1 %v3515_v43 }
 0x13d   :  { %608 = vmatpush1.bf16.msra.mxu0 %v3514_v45 }
 0x13e   :  { %609 = vmatprep.subr.bf16.mxu0 %v3518_v47 }
 0x13f   :  { %651 = vmatpush1.bf16.msra.mxu1 %v3517_v46 }
 0x140   :  { %652 = vmatprep.subr.bf16.mxu1 %v3521_v48 }
 0x141   :  { %610 = vmatpush1.bf16.msra.mxu0 %v3520_v49 }
 0x142   :  { %3182 = vmatprep.subr.bf16.mxu0 %v4112_v2 }
 0x143   :  { %653 = vmatpush1.bf16.msra.mxu1 %v3523_v50 }
 0x144   :  { %3202 = vmatprep.subr.bf16.mxu1 %v4112_v2 }
 0x1b9   :  { %v272_v15 = vpop.xlane.xlu0 %271 }
 0x1ba   :  { %v275_v16 = vmul.f32 0.03125, %v272_v15  ;;  %v3531_v15 = vld [vmem:[#allocation7 + $0x128] ss:$20 sps:$4 sm:$0xff]  }
 0x1bc   :  { %v277_v17 = vsub.f32 %v265_v4, %v275_v16  ;;  %v4517_v16 = vshrl.u32 %v258_v0, 7 }
 0x1bd   :  { %v274_v18 = vpop.xlane.xlu0 %273 }
 0x1be   :  { %v276_v19 = vmul.f32 0.03125, %v274_v18  ;;  %v4481_v20 = vmul.f32 %v4470_v3, %v277_v17  ;;  %v364_v17 = vsub.s32 0, %v4517_v16  ;;  %v372_v18 = vsub.s32 2, %v4517_v16 }
 0x1bf   :  { %v380_v46 = vsub.s32 4, %v4517_v16 }
 0x1c0   :  { %v278_v21 = vsub.f32 %v266_v5, %v276_v19  ;;  %v281_v22 = vmul.f32 %v4481_v20, %v4481_v20  ;;  %v360_v19 = vld [vmem:[#allocation8] sm:$0x1f] }
 0x1c1   :  { %v381_v47 = vrot.slane %v360_v19, %v380_v46 }
 0x1c2   :  { %283 = vadd.xlane.f32.xlu1 %v281_v22  ;;  %v4486_v23 = vmul.f32 %v4470_v3, %v278_v21  ;;  %v376_v21 = vsub.s32 3, %v4517_v16  ;;  %v365_v22 = vrot.slane %v360_v19, %v364_v17 }
 0x1c4   :  { %v282_v24 = vmul.f32 %v4486_v23, %v4486_v23  ;;  %v377_v26 = vrot.slane %v360_v19, %v376_v21 }
 0x1c6   :  { %285 = vadd.xlane.f32.xlu1 %v282_v24 }
 0x24f   :  { %v284_v51 = vpop.xlane.xlu1 %283 }
 0x250   :  { %v287_v52 = vmul.f32 0.03125, %v284_v51 }
 0x252   :  { %v289_v53 = vadd.f32 1e-12, %v287_v52 }
 0x253   :  { %v286_v54 = vpop.xlane.xlu1 %285 }
 0x254   :  { %3652 = vrsqrt.f32 %v289_v53  ;;  %v288_v55 = vmul.f32 0.03125, %v286_v54 }
 0x256   :  { %v290_v56 = vadd.f32 1e-12, %v288_v55 }
 0x258   :  { %3654 = vrsqrt.f32 %v290_v56 }
 0x25e   :  { %v3653_v57 = vpop.eup %3652 }
 0x25f   :  { %v293_v58 = vmul.f32 %v3653_v57, %v4481_v20  ;;  %v368_v20 = vsub.s32 1, %v4517_v16 }
 0x261   :  { %v301_v62 = vmul.f32 %v2873_v59, %v293_v58  ;;  %v369_v0 = vrot.slane %v360_v19, %v368_v20 }
 0x262   :  { %v3655_v60 = vpop.eup %3654 }
 0x263   :  { %v294_v61 = vmul.f32 %v3655_v60, %v4486_v23  ;;  %v4496_v5 = vadd.f32 %v2874_v63, %v301_v62  ;;  %v373_v23 = vrot.slane %v360_v19, %v372_v18 }
 0x265   :  { %v302_v4 = vmul.f32 %v2873_v59, %v294_v61 }
 0x267   :  { %v4498_v6 = vadd.f32 %v2874_v63, %v302_v4  ;;  %v4550_v4 = vld [vmem:[%s4973_s22] sm:$0xff] }
 0x269   :  { %v311_v8 = vpack.c.bf16 %v4498_v6, %v4496_v5 }
 0x26b   :  { %628 = vmatmul.mubr.bf16.vlgmr.msra.gmra.mrb[0].mxu0 %v311_v8  ;;  %671 = vmatmul.mubr.bf16.vlgmr.msra.gmra.mrb[0].mxu1 %v311_v8 }
 0x26c   :  { %3183 = vmatpush3.bf16.msra.mxu0 %v3524_v7  ;;  %3198 = vmatprep.mubr.msk.bf16.mxu0 %vm4114_vm1, %v4112_v2 }
 0x26d   :  { %3184 = vmatprep.subr.bf16.mxu0 %v4112_v2  ;;  %3204 = vmatprep.mubr.msk.bf16.mxu1 %vm4114_vm1, %v4112_v2 }
 0x270   :  { %3185 = vmatpush3.bf16.msra.mxu0 %v3525_v9 }
 0x271   :  { %3186 = vmatprep.subr.bf16.mxu0 %v4112_v2 }
 0x274   :  { %3187 = vmatpush3.bf16.msra.mxu0 %v3526_v10 }
 0x275   :  { %3188 = vmatprep.subr.bf16.mxu0 %v4112_v2 }
 0x278   :  { %3189 = vmatpush3.bf16.msra.mxu0 %v3527_v11  ;;  %v4556_v11 = vld [vmem:[%s4973_s22 + $0x8] sm:$0xff] }
 0x279   :  { %3190 = vmatprep.subr.bf16.mxu0 %v4112_v2 }
 0x27c   :  { %3191 = vmatpush3.bf16.msra.mxu0 %v3528_v12 }
 0x27d   :  { %3192 = vmatprep.subr.bf16.mxu0 %v4112_v2 }
 0x280   :  { %3193 = vmatpush3.bf16.msra.mxu0 %v3529_v13 }
 0x281   :  { %3194 = vmatprep.subr.bf16.mxu0 %v4112_v2 }
 0x284   :  { %3195 = vmatpush3.bf16.msra.mxu0 %v3530_v14 }
 0x285   :  { %3196 = vmatprep.subr.bf16.mxu0 %v4112_v2 }
 0x288   :  { %3197 = vmatpush3.bf16.msra.mxu0 %v3531_v15 }
 0x289   :  { %3226 = vmatprep.subr.bf16.mxu0 %v4112_v2 }
 0x28b   :  { %3199 = vmatmul.mubr.bf16.vlgmr.msra.gmra.mrb[4].mxu0 %v311_v8 }
 0x28c   :  { %3242 = vmatprep.mubr.msk.bf16.mxu0 %vm4114_vm1, %v4112_v2 }
 0x33e   :  { %v629_v24 = vpop.f32.mrb[0].mxu0  ;;  %v672_v25 = vpop.f32.mrb[0].mxu1 }
 0x33f   :  { %v631_v27 = vpop.f32.mrb[1].mxu0  ;;  %v674_v28 = vpop.f32.mrb[1].mxu1  ;;  %v630_v31 = vadd.f32 %v629_v24, %v365_v22  ;;  %v673_v32 = vadd.f32 %v672_v25, %v373_v23 }
 0x340   :  { %v633_v29 = vpop.f32.mrb[2].mxu0  ;;  %v676_v30 = vpop.f32.mrb[2].mxu1  ;;  %v632_v37 = vadd.f32 %v631_v27, %v369_v0  ;;  %v4531_v38 = vadd.f32 %v674_v28, %v377_v26 }
 0x341   :  { %v634_v33 = vadd.f32 %v633_v29, %v365_v22  ;;  %v677_v34 = vadd.f32 %v676_v30, %v373_v23  ;;  %v635_v35 = vpop.f32.mrb[3].mxu0  ;;  %v678_v36 = vpop.f32.mrb[3].mxu1 }
 0x342   :  { %v636_v39 = vadd.f32 %v635_v35, %v369_v0  ;;  %v4533_v40 = vadd.f32 %v678_v36, %v377_v26 }
 0x343   :  { %v722_v41 = vpack.c.bf16 %v634_v33, %v630_v31  ;;  %v794_v42 = vpack.c.bf16 %v677_v34, %v673_v32 }
 0x344   :  { %v723_v43 = vpack.c.bf16 %v636_v39, %v632_v37  ;;  %v724_v45 = vpack.c.bf16 %v4533_v40, %v4531_v38  ;;  %v3539_v38 = vld [vmem:[%s4934_s8 + $0x38] sm:$0xff]  }
 0x346   :  { %3203 = vmatpush3.bf16.xpose.msra.mxu1 %v723_v43 }
 0x347   :  { %3208 = vmatprep.subr.bf16.mxu1 %v4112_v2 }
 0x34d   :  { %3205 = vmatmul.mubr.bf16.vlgmr.msra.gmra.mrb[4].mxu1 %v722_v41 }
 0x34e   :  { %3209 = vmatpush3.bf16.xpose.msra.mxu1 %v794_v42  ;;  %3210 = vmatprep.mubr.msk.bf16.mxu1 %vm4114_vm1, %v4112_v2 }
 0x34f   :  { %3214 = vmatprep.subr.bf16.mxu1 %v4112_v2 }
 0x355   :  { %3211 = vmatmul.mubr.bf16.vlgmr.msra.gmra.mrb[8].mxu1 %v722_v41 }
 0x356   :  { %3216 = vmatprep.mubr.msk.bf16.mxu1 %vm4114_vm1, %v4112_v2 }
 0x35e   :  { %v715_v48 = vpop.f32.mrb[4].mxu0 }
 0x35f   :  { %v3200_v49 = vpop.f32.mrb[5].mxu0  ;;  %v716_v51 = vadd.f32 %v715_v48, %v381_v47  ;;  %v3532_v48 = vld [vmem:[%s4934_s8] sm:$0xff]  }
 0x360   :  { %v718_v50 = vpop.f32.mrb[6].mxu0  ;;  %3227 = vmatpush3.bf16.msra.mxu0 %v3532_v48  ;;  %v3533_v49 = vld [vmem:[%s4934_s8 + $0x8] sm:$0xff]   ;;  %v3544_v48 = vld [vmem:[%s4938_s12 + $0x20] sm:$0xff]  }
 0x361   :  { %v719_v52 = vadd.f32 %v718_v50, %v381_v47  ;;  %v3201_v53 = vpop.f32.mrb[7].mxu0  ;;  %3228 = vmatprep.subr.bf16.mxu0 %v4112_v2  ;;  %v3534_v50 = vld [vmem:[%s4934_s8 + $0x10] sm:$0xff]  }
 0x362   :  { %v3537_v53 = vld [vmem:[%s4934_s8 + $0x28] sm:$0xff]  }
 0x363   :  { %v795_v54 = vpack.c.bf16 %v719_v52, %v716_v51  ;;  %v3535_v51 = vld [vmem:[%s4934_s8 + $0x18] sm:$0xff]   ;;  %v3536_v52 = vld [vmem:[%s4934_s8 + $0x20] sm:$0xff]  }
 0x364   :  { %3229 = vmatpush3.bf16.msra.mxu0 %v3533_v49  ;;  %v3545_v49 = vld [vmem:[%s4938_s12 + $0x28] sm:$0xff]  }
 0x365   :  { %3215 = vmatpush3.bf16.msra.mxu1 %v795_v54  ;;  %3230 = vmatprep.subr.bf16.mxu0 %v4112_v2  ;;  %v3538_v54 = vld [vmem:[%s4934_s8 + $0x30] sm:$0xff]  }
 0x366   :  { %3220 = vmatprep.subr.bf16.mxu1 %v4112_v2 }
 0x368   :  { %3231 = vmatpush3.bf16.msra.mxu0 %v3534_v50  ;;  %v3546_v50 = vld [vmem:[%s4938_s12 + $0x30] sm:$0xff]  }
 0x369   :  { %3232 = vmatprep.subr.bf16.mxu0 %v4112_v2 }
 0x36c   :  { %3233 = vmatpush3.bf16.msra.mxu0 %v3535_v51  ;;  %v3547_v51 = vld [vmem:[%s4938_s12 + $0x38] sm:$0xff]  }
 0x36d   :  { %3234 = vmatprep.subr.bf16.mxu0 %v4112_v2 }
 0x370   :  { %3235 = vmatpush3.bf16.msra.mxu0 %v3536_v52 }
 0x371   :  { %3236 = vmatprep.subr.bf16.mxu0 %v4112_v2 }
 0x374   :  { %3237 = vmatpush3.bf16.msra.mxu0 %v3537_v53 }
 0x375   :  { %3238 = vmatprep.subr.bf16.mxu0 %v4112_v2 }
 0x378   :  { %3239 = vmatpush3.bf16.msra.mxu0 %v3538_v54 }
 0x379   :  { %3240 = vmatprep.subr.bf16.mxu0 %v4112_v2 }
 0x37c   :  { %3241 = vmatpush3.bf16.msra.mxu0 %v3539_v38  ;;  %v3548_v38 = vld [vmem:[#allocation14] sm:$0xff]  }
 0x37d   :  { %3266 = vmatprep.subr.bf16.mxu0 %v4112_v2 }
 0x420   :  { %v759_v55 = vpop.f32.mrb[4].mxu1 }
 0x421   :  { %v3206_v56 = vpop.f32.mrb[5].mxu1  ;;  %v766_v60 = vmul.f32 0.25, %v759_v55 }
 0x422   :  { %v762_v57 = vpop.f32.mrb[6].mxu1 }
 0x423   :  { %v3207_v58 = vpop.f32.mrb[7].mxu1  ;;  %v767_v7 = vmul.f32 0.25, %v762_v57  ;;  %v768_v14 = vadd.f32 %v766_v60, %v4550_v4 }
 0x425   :  { %v769_v19 = vadd.f32 %v767_v7, %v4556_v11  ;;  %v771_v22 = vsel %vm770_vm2, %v768_v14, -inf }
 0x427   :  { %v774_v23 = vsel %vm770_vm2, %v769_v19, -inf }
 0x428   :  { %v830_v59 = vpop.f32.mrb[8].mxu1 }
 0x429   :  { %v837_v61 = vmul.f32 0.25, %v830_v59  ;;  %v3212_v62 = vpop.f32.mrb[9].mxu1 }
 0x42a   :  { %v833_v63 = vpop.f32.mrb[10].mxu1 }
 0x42b   :  { %v838_v8 = vmul.f32 0.25, %v833_v63  ;;  %v3213_v9 = vpop.f32.mrb[11].mxu1  ;;  %v839_v10 = vadd.f32 %v837_v61, %v4550_v4 }
 0x42d   :  { %v841_v12 = vsel %vm770_vm2, %v839_v10, -inf  ;;  %v840_v13 = vadd.f32 %v838_v8, %v4556_v11 }
 0x42e   :  { %842 = vmax.xlane.f32.xlu0 %v841_v12 }
 0x42f   :  { %v844_v15 = vsel %vm770_vm2, %v840_v13, -inf }
 0x430   :  { %845 = vmax.xlane.f32.xlu1 %v844_v15 }
 0x432   :  { %772 = vmax.xlane.f32.xlu0 %v771_v22 }
 0x434   :  { %775 = vmax.xlane.f32.xlu1 %v774_v23 }
 0x4bb   :  { %v843_v24 = vpop.xlane.xlu0 %842 }
 0x4bc   :  { %v847_v25 = vsub.f32 %v839_v10, %v843_v24 }
 0x4bd   :  { %v846_v0 = vpop.xlane.xlu1 %845 }
 0x4be   :  { %v849_v26 = vmul.f32 1.442695, %v847_v25  ;;  %v848_v27 = vsub.f32 %v840_v13, %v846_v0 }
 0x4bf   :  { %v773_v28 = vpop.xlane.xlu0 %772 }
 0x4c0   :  { %3656 = vpow2.f32 %v849_v26  ;;  %v851_v29 = vmul.f32 1.442695, %v848_v27  ;;  %v777_v30 = vsub.f32 %v768_v14, %v773_v28 }
 0x4c1   :  { %v776_v31 = vpop.xlane.xlu1 %775 }
 0x4c2   :  { %3658 = vpow2.f32 %v851_v29  ;;  %v779_v32 = vmul.f32 1.442695, %v777_v30  ;;  %v778_v33 = vsub.f32 %v769_v19, %v776_v31  ;;  %v2917_v19 = vld [vmem:[%s4935_s9] ss:$0 sm:$0xff] }
 0x4c3   :  { %v3540_v31 = vld [vmem:[%s4938_s12] sm:$0xff]  }
 0x4c4   :  { %3660 = vpow2.f32 %v779_v32  ;;  %v781_v34 = vmul.f32 1.442695, %v778_v33  ;;  %v3541_v32 = vld [vmem:[%s4938_s12 + $0x8] sm:$0xff]  }
 0x4c6   :  { %3662 = vpow2.f32 %v781_v34 }
 0x4ca   :  { %v3657_v35 = vpop.eup %3656 }
 0x4cb   :  { %v853_v36 = vsel %vm770_vm2, %v3657_v35, 0.0 }
 0x4cc   :  { %v3659_v37 = vpop.eup %3658  ;;  %854 = vadd.xlane.f32.xlu0 %v853_v36 }
 0x4cd   :  { %v856_v39 = vsel %vm770_vm2, %v3659_v37, 0.0 }
 0x4ce   :  { %v3661_v41 = vpop.eup %3660  ;;  %857 = vadd.xlane.f32.xlu1 %v856_v39 }
 0x4cf   :  { %v783_v42 = vsel %vm770_vm2, %v3661_v41, 0.0 }
 0x4d0   :  { %v3663_v43 = vpop.eup %3662  ;;  %784 = vadd.xlane.f32.xlu0 %v783_v42 }
 0x4d1   :  { %v786_v47 = vsel %vm770_vm2, %v3663_v43, 0.0 }
 0x4d2   :  { %787 = vadd.xlane.f32.xlu1 %v786_v47  ;;  %v3543_v47 = vld [vmem:[%s4938_s12 + $0x18] sm:$0xff]  }
 0x559   :  { %v855_v55 = vpop.xlane.xlu0 %854 }
 0x55a   :  { %3664 = vrcp.f32 %v855_v55 }
 0x55b   :  { %v858_v56 = vpop.xlane.xlu1 %857 }
 0x55c   :  { %3666 = vrcp.f32 %v858_v56 }
 0x55d   :  { %v785_v58 = vpop.xlane.xlu0 %784 }
 0x55f   :  { %v788_v57 = vpop.xlane.xlu1 %787 }
 0x560   :  { %3668 = vrcp.f32 %v788_v57 }
 0x561   :  { %3670 = vrcp.f32 %v785_v58 }
 0x564   :  { %v3665_v59 = vpop.eup %3664 }
 0x565   :  { %v861_v61 = vmul.f32 %v3665_v59, %v3657_v35  ;;  %v2926_v59 = vld [vmem:[#allocation10] ss:$0 sm:$0xff] }
 0x566   :  { %v3667_v60 = vpop.eup %3666 }
 0x567   :  { %v862_v62 = vmul.f32 %v3667_v60, %v3659_v37 }
 0x569   :  { %v863_v63 = vpack.c.bf16 %v862_v62, %v861_v61 }
 0x56a   :  { %v3669_v7 = vpop.eup %3668 }
 0x56b   :  { %3217 = vmatmul.mubr.msk.bf16.vlgmr.msra.gmra.mrb[12].mxu1 %vm770_vm2, %v863_v63  ;;  %v3671_v8 = vpop.eup %3670  ;;  %v792_v9 = vmul.f32 %v3669_v7, %v3663_v43  ;;  %v3542_v43 = vld [vmem:[%s4938_s12 + $0x10] sm:$0xff]  }
 0x56c   :  { %3221 = vmatpush3.bf16.msra.mxu1 %v724_v45  ;;  %3222 = vmatprep.mubr.msk.bf16.mxu1 %vm4114_vm1, %v4112_v2  ;;  %v791_v10 = vmul.f32 %v3671_v8, %v3661_v41  ;;  %v2927_v7 = vld [vmem:[#allocation11] ss:$0 sm:$0xff] }
 0x56d   :  { %3246 = vmatprep.subr.bf16.mxu1 %v4112_v2 }
 0x56e   :  { %v793_v12 = vpack.c.bf16 %v792_v9, %v791_v10 }
 0x577   :  { %3223 = vmatmul.mubr.msk.bf16.vlgmr.msra.gmra.mrb[12].mxu1 %vm770_vm2, %v793_v12 }
 0x578   :  { %3262 = vmatprep.mubr.msk.bf16.mxu1 %vm4114_vm1, %v4112_v2  ;;  %3247 = vmatpush3.bf16.msra.mxu1 %v3540_v31 }
 0x579   :  { %3248 = vmatprep.subr.bf16.mxu1 %v4112_v2 }
 0x57c   :  { %3249 = vmatpush3.bf16.msra.mxu1 %v3541_v32 }
 0x57d   :  { %3250 = vmatprep.subr.bf16.mxu1 %v4112_v2 }
 0x580   :  { %3251 = vmatpush3.bf16.msra.mxu1 %v3542_v43 }
 0x581   :  { %3252 = vmatprep.subr.bf16.mxu1 %v4112_v2 }
 0x584   :  { %3253 = vmatpush3.bf16.msra.mxu1 %v3543_v47 }
 0x585   :  { %3254 = vmatprep.subr.bf16.mxu1 %v4112_v2 }
 0x588   :  { %3255 = vmatpush3.bf16.msra.mxu1 %v3544_v48 }
 0x589   :  { %3256 = vmatprep.subr.bf16.mxu1 %v4112_v2 }
 0x58c   :  { %3257 = vmatpush3.bf16.msra.mxu1 %v3545_v49 }
 0x58d   :  { %3258 = vmatprep.subr.bf16.mxu1 %v4112_v2 }
 0x590   :  { %3259 = vmatpush3.bf16.msra.mxu1 %v3546_v50 }
 0x591   :  { %3260 = vmatprep.subr.bf16.mxu1 %v4112_v2 }
 0x594   :  { %3261 = vmatpush3.bf16.msra.mxu1 %v3547_v51  ;;  %v2937_v51 = vld [vmem:[#allocation16] ss:$0 sm:$0xff] }
 0x64a   :  { %v945_v40 = vpop.f32.mrb[12].mxu1 }
 0x64b   :  { %v3224_v45 = vpop.f32.mrb[13].mxu1 }
 0x64c   :  { %v948_v13 = vpop.f32.mrb[14].mxu1  ;;  %v3550_v45 = vld [vmem:[#allocation14 + $0x10] sm:$0xff]  }
 0x64d   :  { %v952_v14 = vpack.c.bf16 %v948_v13, %v945_v40  ;;  %v3225_v15 = vpop.f32.mrb[15].mxu1  ;;  %v3549_v40 = vld [vmem:[#allocation14 + $0x8] sm:$0xff]   ;;  %v3551_v13 = vld [vmem:[#allocation14 + $0x18] sm:$0xff]  }
 0x64e   :  { %v3553_v15 = vld [vmem:[#allocation14 + $0x28] sm:$0xff]  }
 0x64f   :  { %3243 = vmatmul.mubr.bf16.vlgmr.msra.gmra.mrb[8].mxu0 %v952_v14  ;;  %v3552_v14 = vld [vmem:[#allocation14 + $0x20] sm:$0xff]  }
 0x650   :  { %3282 = vmatprep.mubr.msk.bf16.mxu0 %vm4114_vm1, %v4112_v2  ;;  %3267 = vmatpush3.bf16.msra.mxu0 %v3548_v38  ;;  %v3565_v38 = vld [vmem:[#allocation7 + $0x170] ss:$20 sps:$4 sm:$0xff]  }
 0x651   :  { %3268 = vmatprep.subr.bf16.mxu0 %v4112_v2 }
 0x654   :  { %3269 = vmatpush3.bf16.msra.mxu0 %v3549_v40 }
 0x655   :  { %3270 = vmatprep.subr.bf16.mxu0 %v4112_v2 }
 0x658   :  { %3271 = vmatpush3.bf16.msra.mxu0 %v3550_v45 }
 0x659   :  { %3272 = vmatprep.subr.bf16.mxu0 %v4112_v2 }
 0x65c   :  { %3273 = vmatpush3.bf16.msra.mxu0 %v3551_v13 }
 0x65d   :  { %3274 = vmatprep.subr.bf16.mxu0 %v4112_v2 }
 0x660   :  { %3275 = vmatpush3.bf16.msra.mxu0 %v3552_v14 }
 0x661   :  { %3276 = vmatprep.subr.bf16.mxu0 %v4112_v2 }
 0x664   :  { %3277 = vmatpush3.bf16.msra.mxu0 %v3553_v15 }
 0x665   :  { %3278 = vmatprep.subr.bf16.mxu0 %v4112_v2 }
 0x722   :  { %v1058_v22 = vpop.f32.mrb[8].mxu0 }
 0x723   :  { %v1059_v23 = vadd.f32 %v2917_v19, %v1058_v22  ;;  %v3244_v24 = vpop.f32.mrb[9].mxu0  ;;  %v3555_v22 = vld [vmem:[#allocation14 + $0x38] sm:$0xff]  }
 0x724   :  { %v1061_v25 = vpop.f32.mrb[10].mxu0 }
 0x725   :  { %v1065_v0 = vadd.f32 %v1059_v23, %v4496_v5  ;;  %v1062_v26 = vadd.f32 %v2917_v19, %v1061_v25  ;;  %v3245_v27 = vpop.f32.mrb[11].mxu0  ;;  %v3554_v19 = vld [vmem:[#allocation14 + $0x30] sm:$0xff]   ;;  %v2928_v23 = vld [vmem:[#allocation13] ss:$0 sm:$0xff] }
 0x726   :  { %3279 = vmatpush3.bf16.msra.mxu0 %v3554_v19 }
 0x727   :  { %v1066_v28 = vadd.f32 %v1062_v26, %v4498_v6  ;;  %v1069_v29 = vmul.f32 %v4470_v3, %v1065_v0  ;;  %3280 = vmatprep.subr.bf16.mxu0 %v4112_v2 }
 0x729   :  { %1071 = vadd.xlane.f32.xlu0 %v1069_v29  ;;  %v1070_v30 = vmul.f32 %v4470_v3, %v1066_v28 }
 0x72a   :  { %3281 = vmatpush3.bf16.msra.mxu0 %v3555_v22 }
 0x72b   :  { %1073 = vadd.xlane.f32.xlu1 %v1070_v30 }
 0x7b6   :  { %v1072_v5 = vpop.xlane.xlu0 %1071 }
 0x7b7   :  { %v1075_v6 = vmul.f32 0.03125, %v1072_v5 }
 0x7b8   :  { %v1074_v33 = vpop.xlane.xlu1 %1073 }
 0x7b9   :  { %v1077_v34 = vsub.f32 %v1065_v0, %v1075_v6  ;;  %v1076_v35 = vmul.f32 0.03125, %v1074_v33 }
 0x7bb   :  { %v1078_v36 = vsub.f32 %v1066_v28, %v1076_v35  ;;  %v1079_v37 = vmul.f32 %v4470_v3, %v1077_v34 }
 0x7bd   :  { %v1081_v39 = vmul.f32 %v1079_v37, %v1079_v37  ;;  %v1080_v41 = vmul.f32 %v4470_v3, %v1078_v36 }
 0x7bf   :  { %1083 = vadd.xlane.f32.xlu0 %v1081_v39  ;;  %v1082_v42 = vmul.f32 %v1080_v41, %v1080_v41 }
 0x7c1   :  { %1085 = vadd.xlane.f32.xlu1 %v1082_v42 }
 0x84c   :  { %v1084_v52 = vpop.xlane.xlu0 %1083 }
 0x84d   :  { %v1087_v53 = vmul.f32 0.03125, %v1084_v52 }
 0x84e   :  { %v1086_v54 = vpop.xlane.xlu1 %1085 }
 0x84f   :  { %v1089_v55 = vadd.f32 1e-12, %v1087_v53  ;;  %v1088_v56 = vmul.f32 0.03125, %v1086_v54 }
 0x851   :  { %3672 = vrsqrt.f32 %v1089_v55  ;;  %v1090_v57 = vadd.f32 1e-12, %v1088_v56 }
 0x853   :  { %3674 = vrsqrt.f32 %v1090_v57 }
 0x85b   :  { %v3673_v58 = vpop.eup %3672 }
 0x85c   :  { %v1093_v60 = vmul.f32 %v3673_v58, %v1079_v37 }
 0x85d   :  { %v3675_v61 = vpop.eup %3674 }
 0x85e   :  { %v1094_v62 = vmul.f32 %v3675_v61, %v1080_v41  ;;  %v1101_v63 = vmul.f32 %v2926_v59, %v1093_v60 }
 0x860   :  { %v1102_v8 = vmul.f32 %v2926_v59, %v1094_v62  ;;  %v4653_v9 = vadd.f32 %v2927_v7, %v1101_v63  ;;  %v3556_v62 = vld [vmem:[#allocation7 + $0x140] ss:$20 sps:$4 sm:$0xff]   ;;  %v3558_v63 = vld [vmem:[#allocation7 + $0x144] ss:$20 sps:$4 sm:$0xff]  }
 0x861   :  { %1687 = vmatprep.subr.bf16.mxu1 %v3558_v63  ;;  %v2947_v63 = vld [vmem:[#allocation19] ss:$0 sm:$0xff] }
 0x862   :  { %v4655_v10 = vadd.f32 %v2927_v7, %v1102_v8  ;;  %v3561_v7 = vld [vmem:[#allocation7 + $0x14c] ss:$20 sps:$4 sm:$0xff]  }
 0x863   :  { %v3564_v8 = vld [vmem:[#allocation7 + $0x16c] ss:$20 sps:$4 sm:$0xff]   ;;  %1730 = vmatprep.subr.bf16.mxu0 %v3561_v7 }
 0x864   :  { %v1111_v12 = vpack.c.bf16 %v4655_v10, %v4653_v9 }
 0x866   :  { %3263 = vmatmul.mubr.bf16.vlgmr.msra.gmra.mrb[16].mxu1 %v1111_v12  ;;  %v3567_v12 = vld [vmem:[#allocation7 + $0x174] ss:$20 sps:$4 sm:$0xff]  }
 0x867   :  { %1719 = vmatprep.mubr.bf16.mxu1 %v4113_v44  ;;  %1688 = vmatpush1.bf16.msra.mxu1 %v3556_v62 }
 0x868   :  { %1689 = vmatprep.subr.bf16.mxu1 %v3564_v8 }
 0x939   :  { %v1217_v24 = vpop.f32.mrb[16].mxu1 }
 0x93a   :  { %v1218_v25 = vadd.f32 %v2928_v23, %v1217_v24  ;;  %v3264_v0 = vpop.f32.mrb[17].mxu1 }
 0x93b   :  { %v1220_v26 = vpop.f32.mrb[18].mxu1  ;;  %v3568_v0 = vld [vmem:[#allocation7 + $0x190] ss:$20 sps:$4 sm:$0xff]  }
 0x93c   :  { %v1226_v27 = vmul.f32 0.044715, %v1218_v25  ;;  %v1221_v28 = vadd.f32 %v2928_v23, %v1220_v26  ;;  %v3265_v29 = vpop.f32.mrb[19].mxu1  ;;  %v1224_v42 = vmul.f32 0.5, %v1218_v25  ;;  %v3573_v26 = vld [vmem:[#allocation7 + $0x19c] ss:$20 sps:$4 sm:$0xff]  }
 0x93d   :  { %v3574_v29 = vld [vmem:[#allocation7 + $0x1b8] ss:$20 sps:$4 sm:$0xff]  }
 0x93e   :  { %v1228_v30 = vmul.f32 %v1226_v27, %v1218_v25  ;;  %v1227_v31 = vmul.f32 0.044715, %v1221_v28  ;;  %v1225_v43 = vmul.f32 0.5, %v1221_v28  ;;  %v3571_v27 = vld [vmem:[#allocation7 + $0x198] ss:$20 sps:$4 sm:$0xff]  }
 0x940   :  { %v1230_v32 = vmul.f32 %v1228_v30, %v1218_v25  ;;  %v1229_v5 = vmul.f32 %v1227_v31, %v1221_v28  ;;  %v3579_v30 = vld [vmem:[#allocation7 + $0x1c4] ss:$20 sps:$4 sm:$0xff]   ;;  %v3577_v31 = vld [vmem:[#allocation7 + $0x1c0] ss:$20 sps:$4 sm:$0xff]  }
 0x942   :  { %v1232_v6 = vadd.f32 %v1230_v32, %v1218_v25  ;;  %v1231_v33 = vmul.f32 %v1229_v5, %v1221_v28  ;;  %v3570_v25 = vld [vmem:[#allocation7 + $0x194] ss:$20 sps:$4 sm:$0xff]   ;;  %v3582_v32 = vld [vmem:[#allocation7 + $0x1e4] ss:$20 sps:$4 sm:$0xff]  }
 0x943   :  { %v3580_v5 = vld [vmem:[#allocation7 + $0x1e0] ss:$20 sps:$4 sm:$0xff]  }
 0x944   :  { %v1234_v34 = vmul.f32 0.7978846, %v1232_v6  ;;  %v1233_v35 = vadd.f32 %v1231_v33, %v1221_v28  ;;  %v3576_v28 = vld [vmem:[#allocation7 + $0x1bc] ss:$20 sps:$4 sm:$0xff]   ;;  %v3585_v6 = vld [vmem:[#allocation7 + $0x1ec] ss:$20 sps:$4 sm:$0xff]  }
 0x945   :  { %v3583_v33 = vld [vmem:[#allocation7 + $0x1e8] ss:$20 sps:$4 sm:$0xff]  }
 0x946   :  { %3676 = vtanh.f32 %v1234_v34  ;;  %v1235_v36 = vmul.f32 0.7978846, %v1233_v35  ;;  %v3588_v34 = vld [vmem:[#allocation7 + $0x20c] ss:$20 sps:$4 sm:$0xff]   ;;  %v3586_v35 = vld [vmem:[#allocation7 + $0x208] ss:$20 sps:$4 sm:$0xff]  }
 0x948   :  { %3678 = vtanh.f32 %v1235_v36  ;;  %v3591_v36 = vld [vmem:[#allocation7 + $0x214] ss:$20 sps:$4 sm:$0xff]  }
 0x950   :  { %v3677_v37 = vpop.eup %3676 }
 0x951   :  { %v1238_v39 = vadd.f32 1.0, %v3677_v37  ;;  %v3589_v37 = vld [vmem:[#allocation7 + $0x210] ss:$20 sps:$4 sm:$0xff]  }
 0x952   :  { %v3679_v41 = vpop.eup %3678 }
 0x953   :  { %v1239_v47 = vadd.f32 1.0, %v3679_v41  ;;  %v1240_v48 = vmul.f32 %v1238_v39, %v1224_v42  ;;  %v3594_v39 = vld [vmem:[#allocation7 + $0x234] ss:$20 sps:$4 sm:$0xff]   ;;  %v3592_v41 = vld [vmem:[#allocation7 + $0x230] ss:$20 sps:$4 sm:$0xff]  }
 0x954   :  { %v3597_v42 = vld [vmem:[#allocation7 + $0x23c] ss:$20 sps:$4 sm:$0xff]  }
 0x955   :  { %v1241_v49 = vmul.f32 %v1239_v47, %v1225_v43  ;;  %v3595_v43 = vld [vmem:[#allocation7 + $0x238] ss:$20 sps:$4 sm:$0xff]   ;;  %v3600_v47 = vld [vmem:[#allocation7 + $0x25c] ss:$20 sps:$4 sm:$0xff]  }
 0x957   :  { %v1242_v50 = vpack.c.bf16 %v1241_v49, %v1240_v48  ;;  %v3598_v48 = vld [vmem:[#allocation7 + $0x258] ss:$20 sps:$4 sm:$0xff]  }
 0x958   :  { %v3603_v49 = vld [vmem:[#allocation7 + $0x264] ss:$20 sps:$4 sm:$0xff]  }
 0x959   :  { %3283 = vmatmul.mubr.bf16.vlgmr.msra.gmra.mrb[12].mxu0 %v1242_v50  ;;  %v3601_v50 = vld [vmem:[#allocation7 + $0x260] ss:$20 sps:$4 sm:$0xff]  }
 0x95a   :  { %1762 = vmatprep.mubr.bf16.mxu0 %v4113_v44  ;;  %v3559_v44 = vld [vmem:[#allocation7 + $0x148] ss:$20 sps:$4 sm:$0xff]  }
 0x95b   :  { %1731 = vmatpush1.bf16.msra.mxu0 %v3559_v44 }
 0x95c   :  { %1732 = vmatprep.subr.bf16.mxu0 %v3567_v12  ;;  %v3604_v12 = vld [vmem:[#allocation7 + $0x150] ss:$20 sps:$4 sm:$0xff]  }
 0x95f   :  { %1733 = vmatpush1.bf16.msra.mxu0 %v3565_v38  ;;  %v3605_v38 = vld [vmem:[#allocation7 + $0x178] ss:$20 sps:$4 sm:$0xff]  }
 0x960   :  { %1734 = vmatprep.subr.bf16.mxu0 %v3573_v26 }
 0x963   :  { %1735 = vmatpush1.bf16.msra.mxu0 %v3571_v27 }
 0x964   :  { %1736 = vmatprep.subr.bf16.mxu0 %v3579_v30 }
 0x967   :  { %1737 = vmatpush1.bf16.msra.mxu0 %v3577_v31 }
 0x968   :  { %1738 = vmatprep.subr.bf16.mxu0 %v3585_v6 }
 0x96b   :  { %1739 = vmatpush1.bf16.msra.mxu0 %v3583_v33 }
 0x96c   :  { %1740 = vmatprep.subr.bf16.mxu0 %v3591_v36 }
 0x96f   :  { %1741 = vmatpush1.bf16.msra.mxu0 %v3589_v37 }
 0x970   :  { %1742 = vmatprep.subr.bf16.mxu0 %v3597_v42 }
 0x973   :  { %1743 = vmatpush1.bf16.msra.mxu0 %v3595_v43 }
 0x974   :  { %1744 = vmatprep.subr.bf16.mxu0 %v3603_v49 }
 0x977   :  { %1745 = vmatpush1.bf16.msra.mxu0 %v3601_v50 }
 0x978   :  { %3306 = vmatprep.subr.bf16.mxu0 %v4112_v2 }
 0xa2c   :  { %v1348_v52 = vpop.f32.mrb[12].mxu0 }
 0xa2d   :  { %v1349_v53 = vadd.f32 %v2937_v51, %v1348_v52  ;;  %v3284_v54 = vpop.f32.mrb[13].mxu0 }
 0xa2e   :  { %v1351_v55 = vpop.f32.mrb[14].mxu0 }
 0xa2f   :  { %v1355_v56 = vadd.f32 %v1349_v53, %v4653_v9  ;;  %v1352_v57 = vadd.f32 %v2937_v51, %v1351_v55  ;;  %v3285_v58 = vpop.f32.mrb[15].mxu0  ;;  %v3562_v9 = vld [vmem:[#allocation7 + $0x168] ss:$20 sps:$4 sm:$0xff]  }
 0xa30   :  { %1690 = vmatpush1.bf16.msra.mxu1 %v3562_v9  ;;  %v2946_v58 = vld [vmem:[#allocation17] ss:$0 sm:$0xff] }
 0xa31   :  { %v1356_v59 = vadd.f32 %v1352_v57, %v4655_v10  ;;  %v1359_v60 = vmul.f32 %v4470_v3, %v1355_v56  ;;  %1691 = vmatprep.subr.bf16.mxu1 %v3570_v25 }
 0xa33   :  { %1361 = vadd.xlane.f32.xlu0 %v1359_v60  ;;  %v1360_v61 = vmul.f32 %v4470_v3, %v1356_v59 }
 0xa34   :  { %1692 = vmatpush1.bf16.msra.mxu1 %v3568_v0 }
 0xa35   :  { %1363 = vadd.xlane.f32.xlu1 %v1360_v61  ;;  %1693 = vmatprep.subr.bf16.mxu1 %v3576_v28 }
 0xa38   :  { %1694 = vmatpush1.bf16.msra.mxu1 %v3574_v29 }
 0xa39   :  { %1695 = vmatprep.subr.bf16.mxu1 %v3582_v32 }
 0xa3c   :  { %1696 = vmatpush1.bf16.msra.mxu1 %v3580_v5 }
 0xa3d   :  { %1697 = vmatprep.subr.bf16.mxu1 %v3588_v34 }
 0xa40   :  { %1698 = vmatpush1.bf16.msra.mxu1 %v3586_v35 }
 0xa41   :  { %1699 = vmatprep.subr.bf16.mxu1 %v3594_v39 }
 0xa44   :  { %1700 = vmatpush1.bf16.msra.mxu1 %v3592_v41 }
 0xa45   :  { %1701 = vmatprep.subr.bf16.mxu1 %v3600_v47 }
 0xa48   :  { %1702 = vmatpush1.bf16.msra.mxu1 %v3598_v48 }
 0xa49   :  { %3286 = vmatprep.subr.bf16.mxu1 %v4112_v2 }
 0xac0   :  { %v1362_v10 = vpop.xlane.xlu0 %1361 }
 0xac1   :  { %v1365_v40 = vmul.f32 0.03125, %v1362_v10  ;;  %v3606_v10 = vld [vmem:[#allocation7 + $0x1a0] ss:$20 sps:$4 sm:$0xff]  }
 0xac2   :  { %v1364_v45 = vpop.xlane.xlu1 %1363 }
 0xac3   :  { %v1367_v13 = vsub.f32 %v1355_v56, %v1365_v40  ;;  %v1366_v14 = vmul.f32 0.03125, %v1364_v45  ;;  %v3607_v40 = vld [vmem:[#allocation7 + $0x1c8] ss:$20 sps:$4 sm:$0xff]   ;;  %v3608_v45 = vld [vmem:[#allocation7 + $0x1f0] ss:$20 sps:$4 sm:$0xff]  }
 0xac5   :  { %v1368_v15 = vsub.f32 %v1356_v59, %v1366_v14  ;;  %v4673_v19 = vmul.f32 %v4470_v3, %v1367_v13  ;;  %v3609_v13 = vld [vmem:[#allocation7 + $0x218] ss:$20 sps:$4 sm:$0xff]   ;;  %v3610_v14 = vld [vmem:[#allocation7 + $0x240] ss:$20 sps:$4 sm:$0xff]  }
 0xac7   :  { %v1371_v22 = vmul.f32 %v4673_v19, %v4673_v19  ;;  %v4678_v23 = vmul.f32 %v4470_v3, %v1368_v15  ;;  %v3611_v15 = vld [vmem:[#allocation7 + $0x268] ss:$20 sps:$4 sm:$0xff]  }
 0xac9   :  { %1373 = vadd.xlane.f32.xlu0 %v1371_v22  ;;  %v1372_v24 = vmul.f32 %v4678_v23, %v4678_v23 }
 0xacb   :  { %1375 = vadd.xlane.f32.xlu1 %v1372_v24 }
 0xb56   :  { %v1374_v51 = vpop.xlane.xlu0 %1373 }
 0xb57   :  { %v1377_v52 = vmul.f32 0.03125, %v1374_v51 }
 0xb58   :  { %v1376_v53 = vpop.xlane.xlu1 %1375 }
 0xb59   :  { %v1379_v54 = vadd.f32 1e-12, %v1377_v52  ;;  %v1378_v55 = vmul.f32 0.03125, %v1376_v53 }
 0xb5b   :  { %3680 = vrsqrt.f32 %v1379_v54  ;;  %v1380_v56 = vadd.f32 1e-12, %v1378_v55 }
 0xb5d   :  { %3682 = vrsqrt.f32 %v1380_v56 }
 0xb65   :  { %v3681_v57 = vpop.eup %3680 }
 0xb66   :  { %v1383_v59 = vmul.f32 %v3681_v57, %v4673_v19  ;;  %v1452_v19 = vld [vmem:[#allocation8 + $0x5] sm:$0x1f] }
 0xb67   :  { %v3683_v60 = vpop.eup %3682  ;;  %v1457_v22 = vrot.slane %v1452_v19, %v364_v17  ;;  %v1461_v0 = vrot.slane %v1452_v19, %v368_v20  ;;  %v1469_v26 = vrot.slane %v1452_v19, %v376_v21  ;;  %v1473_v41 = vrot.slane %v1452_v19, %v380_v46 }
 0xb68   :  { %v1384_v61 = vmul.f32 %v3683_v60, %v4678_v23  ;;  %v1391_v62 = vmul.f32 %v2946_v58, %v1383_v59  ;;  %v1465_v23 = vrot.slane %v1452_v19, %v372_v18 }
 0xb6a   :  { %v1392_v44 = vmul.f32 %v2946_v58, %v1384_v61  ;;  %v4686_v7 = vadd.f32 %v2947_v63, %v1391_v62 }
 0xb6c   :  { %v4688_v8 = vadd.f32 %v2947_v63, %v1392_v44 }
 0xb6e   :  { %v1401_v9 = vpack.c.bf16 %v4688_v8, %v4686_v7 }
 0xb70   :  { %1720 = vmatmul.mubr.bf16.vlgmr.msra.gmra.mrb[20].mxu1 %v1401_v9  ;;  %1763 = vmatmul.mubr.bf16.vlgmr.msra.gmra.mrb[16].mxu0 %v1401_v9 }
 0xb71   :  { %3287 = vmatpush3.bf16.msra.mxu1 %v3604_v12  ;;  %3302 = vmatprep.mubr.msk.bf16.mxu1 %vm4114_vm1, %v4112_v2 }
 0xb72   :  { %3288 = vmatprep.subr.bf16.mxu1 %v4112_v2  ;;  %3308 = vmatprep.mubr.msk.bf16.mxu0 %vm4114_vm1, %v4112_v2 }
 0xb75   :  { %3289 = vmatpush3.bf16.msra.mxu1 %v3605_v38 }
 0xb76   :  { %3290 = vmatprep.subr.bf16.mxu1 %v4112_v2 }
 0xb79   :  { %3291 = vmatpush3.bf16.msra.mxu1 %v3606_v10 }
 0xb7a   :  { %3292 = vmatprep.subr.bf16.mxu1 %v4112_v2 }
 0xb7d   :  { %3293 = vmatpush3.bf16.msra.mxu1 %v3607_v40 }
 0xb7e   :  { %3294 = vmatprep.subr.bf16.mxu1 %v4112_v2 }
 0xb81   :  { %3295 = vmatpush3.bf16.msra.mxu1 %v3608_v45 }
 0xb82   :  { %3296 = vmatprep.subr.bf16.mxu1 %v4112_v2 }
 0xb85   :  { %3297 = vmatpush3.bf16.msra.mxu1 %v3609_v13 }
 0xb86   :  { %3298 = vmatprep.subr.bf16.mxu1 %v4112_v2 }
 0xb89   :  { %3299 = vmatpush3.bf16.msra.mxu1 %v3610_v14 }
 0xb8a   :  { %3300 = vmatprep.subr.bf16.mxu1 %v4112_v2 }
 0xb8d   :  { %3301 = vmatpush3.bf16.msra.mxu1 %v3611_v15 }
 0xb8e   :  { %3312 = vmatprep.subr.bf16.mxu1 %v4112_v2 }
 0xb90   :  { %3303 = vmatmul.mubr.bf16.vlgmr.msra.gmra.mrb[24].mxu1 %v1401_v9 }
 0xb91   :  { %3314 = vmatprep.mubr.msk.bf16.mxu1 %vm4114_vm1, %v4112_v2 }
 0xc43   :  { %v1721_v24 = vpop.f32.mrb[20].mxu1  ;;  %v1764_v25 = vpop.f32.mrb[16].mxu0 }
 0xc44   :  { %v1723_v27 = vpop.f32.mrb[21].mxu1  ;;  %v1766_v28 = vpop.f32.mrb[17].mxu0  ;;  %v1722_v31 = vadd.f32 %v1721_v24, %v1457_v22  ;;  %v1765_v32 = vadd.f32 %v1764_v25, %v1465_v23 }
 0xc45   :  { %v1725_v29 = vpop.f32.mrb[22].mxu1  ;;  %v1768_v30 = vpop.f32.mrb[18].mxu0  ;;  %v1724_v34 = vadd.f32 %v1723_v27, %v1461_v0  ;;  %v4714_v18 = vadd.f32 %v1766_v28, %v1469_v26 }
 0xc46   :  { %v1726_v5 = vadd.f32 %v1725_v29, %v1457_v22  ;;  %v1769_v6 = vadd.f32 %v1768_v30, %v1465_v23  ;;  %v1727_v17 = vpop.f32.mrb[23].mxu1  ;;  %v1770_v33 = vpop.f32.mrb[19].mxu0 }
 0xc47   :  { %v1728_v35 = vadd.f32 %v1727_v17, %v1461_v0  ;;  %v4716_v36 = vadd.f32 %v1770_v33, %v1469_v26  ;;  %v3613_v17 = vld [vmem:[%s4934_s8 + $0x48] sm:$0xff]   ;;  %v3614_v33 = vld [vmem:[%s4934_s8 + $0x50] sm:$0xff]  }
 0xc48   :  { %v1814_v20 = vpack.c.bf16 %v1726_v5, %v1722_v31  ;;  %v1885_v37 = vpack.c.bf16 %v1769_v6, %v1765_v32  ;;  %v3612_v6 = vld [vmem:[%s4934_s8 + $0x40] sm:$0xff]  }
 0xc49   :  { %v1815_v39 = vpack.c.bf16 %v1728_v35, %v1724_v34  ;;  %v1816_v21 = vpack.c.bf16 %v4716_v36, %v4714_v18  ;;  %v3615_v34 = vld [vmem:[%s4934_s8 + $0x58] sm:$0xff]   ;;  %v3616_v35 = vld [vmem:[%s4934_s8 + $0x60] sm:$0xff]  }
 0xc4a   :  { %3313 = vmatpush3.bf16.xpose.msra.mxu1 %v1885_v37  ;;  %v3618_v37 = vld [vmem:[%s4934_s8 + $0x70] sm:$0xff]   ;;  %v3619_v18 = vld [vmem:[%s4934_s8 + $0x78] sm:$0xff]  }
 0xc4b   :  { %3307 = vmatpush3.bf16.xpose.msra.mxu0 %v1815_v39  ;;  %3330 = vmatprep.subr.bf16.mxu1 %v4112_v2 }
 0xc4c   :  { %3318 = vmatprep.subr.bf16.mxu0 %v4112_v2 }
 0xc51   :  { %3315 = vmatmul.mubr.bf16.vlgmr.msra.gmra.mrb[28].mxu1 %v1814_v20 }
 0xc52   :  { %3309 = vmatmul.mubr.bf16.vlgmr.msra.gmra.mrb[20].mxu0 %v1814_v20  ;;  %3346 = vmatprep.mubr.msk.bf16.mxu1 %vm4114_vm1, %v4112_v2  ;;  %v3617_v20 = vld [vmem:[%s4934_s8 + $0x68] sm:$0xff]  }
 0xc53   :  { %3320 = vmatprep.mubr.msk.bf16.mxu0 %vm4114_vm1, %v4112_v2  ;;  %3331 = vmatpush3.bf16.msra.mxu1 %v3612_v6 }
 0xc54   :  { %3332 = vmatprep.subr.bf16.mxu1 %v4112_v2 }
 0xc57   :  { %3333 = vmatpush3.bf16.msra.mxu1 %v3613_v17 }
 0xc58   :  { %3334 = vmatprep.subr.bf16.mxu1 %v4112_v2 }
 0xc5b   :  { %3335 = vmatpush3.bf16.msra.mxu1 %v3614_v33  ;;  %v3016_v33 = vld [vmem:[#allocation10 + $0x1] ss:$0 sm:$0xff] }
 0xc5c   :  { %3336 = vmatprep.subr.bf16.mxu1 %v4112_v2 }
 0xc5f   :  { %3337 = vmatpush3.bf16.msra.mxu1 %v3615_v34 }
 0xc60   :  { %3338 = vmatprep.subr.bf16.mxu1 %v4112_v2 }
 0xc63   :  { %v1807_v42 = vpop.f32.mrb[24].mxu1  ;;  %3339 = vmatpush3.bf16.msra.mxu1 %v3616_v35 }
 0xc64   :  { %v3304_v43 = vpop.f32.mrb[25].mxu1  ;;  %v1808_v48 = vadd.f32 %v1807_v42, %v1473_v41  ;;  %3340 = vmatprep.subr.bf16.mxu1 %v4112_v2 }
 0xc65   :  { %v1810_v47 = vpop.f32.mrb[26].mxu1 }
 0xc66   :  { %v1811_v49 = vadd.f32 %v1810_v47, %v1473_v41  ;;  %v3305_v50 = vpop.f32.mrb[27].mxu1 }
 0xc67   :  { %3341 = vmatpush3.bf16.msra.mxu1 %v3617_v20 }
 0xc68   :  { %v1886_v51 = vpack.c.bf16 %v1811_v49, %v1808_v48  ;;  %3342 = vmatprep.subr.bf16.mxu1 %v4112_v2 }
 0xc6a   :  { %3319 = vmatpush3.bf16.msra.mxu0 %v1886_v51 }
 0xc6b   :  { %3324 = vmatprep.subr.bf16.mxu0 %v4112_v2  ;;  %3343 = vmatpush3.bf16.msra.mxu1 %v3618_v37 }
 0xc6c   :  { %3344 = vmatprep.subr.bf16.mxu1 %v4112_v2 }
 0xc6f   :  { %3345 = vmatpush3.bf16.msra.mxu1 %v3619_v18 }
 0xc70   :  { %3370 = vmatprep.subr.bf16.mxu1 %v4112_v2 }
 0xd24   :  { %v1921_v52 = vpop.f32.mrb[28].mxu1 }
 0xd25   :  { %v1928_v53 = vmul.f32 0.25, %v1921_v52  ;;  %v1851_v54 = vpop.f32.mrb[20].mxu0  ;;  %v3316_v55 = vpop.f32.mrb[29].mxu1 }
 0xd26   :  { %v1858_v56 = vmul.f32 0.25, %v1851_v54  ;;  %v3310_v57 = vpop.f32.mrb[21].mxu0  ;;  %v1924_v58 = vpop.f32.mrb[30].mxu1 }
 0xd27   :  { %v1929_v59 = vmul.f32 0.25, %v1924_v58  ;;  %v1854_v16 = vpop.f32.mrb[22].mxu0  ;;  %v3317_v46 = vpop.f32.mrb[31].mxu1  ;;  %v1930_v60 = vadd.f32 %v1928_v53, %v4550_v4 }
 0xd28   :  { %v1859_v61 = vmul.f32 0.25, %v1854_v16  ;;  %v3311_v62 = vpop.f32.mrb[23].mxu0  ;;  %v1860_v12 = vadd.f32 %v1858_v56, %v4550_v4  ;;  %v3007_v16 = vld [vmem:[%s4935_s9 + $0x1] ss:$0 sm:$0xff] }
 0xd29   :  { %v1932_v63 = vsel %vm770_vm2, %v1930_v60, -inf  ;;  %v1931_v44 = vadd.f32 %v1929_v59, %v4556_v11 }
 0xd2a   :  { %1933 = vmax.xlane.f32.xlu0 %v1932_v63  ;;  %v1861_v38 = vadd.f32 %v1859_v61, %v4556_v11  ;;  %v1862_v10 = vsel %vm770_vm2, %v1860_v12, -inf }
 0xd2b   :  { %v1935_v9 = vsel %vm770_vm2, %v1931_v44, -inf }
 0xd2c   :  { %1936 = vmax.xlane.f32.xlu1 %v1935_v9  ;;  %v1865_v40 = vsel %vm770_vm2, %v1861_v38, -inf }
 0xd2e   :  { %1863 = vmax.xlane.f32.xlu0 %v1862_v10 }
 0xd30   :  { %1866 = vmax.xlane.f32.xlu1 %v1865_v40  ;;  %v3620_v40 = vld [vmem:[%s4938_s12 + $0x40] sm:$0xff]  }
 0xdb7   :  { %v1934_v45 = vpop.xlane.xlu0 %1933 }
 0xdb8   :  { %v1938_v13 = vsub.f32 %v1930_v60, %v1934_v45  ;;  %v3621_v45 = vld [vmem:[%s4938_s12 + $0x48] sm:$0xff]  }
 0xdb9   :  { %v1937_v14 = vpop.xlane.xlu1 %1936 }
 0xdba   :  { %v1940_v15 = vmul.f32 1.442695, %v1938_v13  ;;  %v1939_v19 = vsub.f32 %v1931_v44, %v1937_v14 }
 0xdbb   :  { %v1864_v22 = vpop.xlane.xlu0 %1863 }
 0xdbc   :  { %3684 = vpow2.f32 %v1940_v15  ;;  %v1942_v4 = vmul.f32 1.442695, %v1939_v19  ;;  %v1868_v23 = vsub.f32 %v1860_v12, %v1864_v22 }
 0xdbd   :  { %v1867_v24 = vpop.xlane.xlu1 %1866 }
 0xdbe   :  { %3686 = vpow2.f32 %v1942_v4  ;;  %v1870_v25 = vmul.f32 1.442695, %v1868_v23  ;;  %v1869_v11 = vsub.f32 %v1861_v38, %v1867_v24 }
 0xdc0   :  { %3688 = vpow2.f32 %v1870_v25  ;;  %v1872_v0 = vmul.f32 1.442695, %v1869_v11  ;;  %v3622_v25 = vld [vmem:[%s4938_s12 + $0x50] sm:$0xff]   ;;  %v3623_v11 = vld [vmem:[%s4938_s12 + $0x58] sm:$0xff]  }
 0xdc2   :  { %3690 = vpow2.f32 %v1872_v0  ;;  %v3624_v0 = vld [vmem:[%s4938_s12 + $0x60] sm:$0xff]  }
 0xdc6   :  { %v3685_v26 = vpop.eup %3684 }
 0xdc7   :  { %v1944_v27 = vsel %vm770_vm2, %v3685_v26, 0.0 }
 0xdc8   :  { %v3687_v28 = vpop.eup %3686  ;;  %1945 = vadd.xlane.f32.xlu0 %v1944_v27  ;;  %v3626_v27 = vld [vmem:[%s4938_s12 + $0x70] sm:$0xff]  }
 0xdc9   :  { %v1947_v29 = vsel %vm770_vm2, %v3687_v28, 0.0 }
 0xdca   :  { %v3689_v30 = vpop.eup %3688  ;;  %1948 = vadd.xlane.f32.xlu1 %v1947_v29 }
 0xdcb   :  { %v1874_v31 = vsel %vm770_vm2, %v3689_v30, 0.0 }
 0xdcc   :  { %v3691_v32 = vpop.eup %3690  ;;  %1875 = vadd.xlane.f32.xlu0 %v1874_v31 }
 0xdcd   :  { %v1877_v5 = vsel %vm770_vm2, %v3691_v32, 0.0 }
 0xdce   :  { %1878 = vadd.xlane.f32.xlu1 %v1877_v5 }
 0xe55   :  { %v1946_v39 = vpop.xlane.xlu0 %1945 }
 0xe56   :  { %3692 = vrcp.f32 %v1946_v39  ;;  %v3017_v39 = vld [vmem:[#allocation11 + $0x1] ss:$0 sm:$0xff] }
 0xe57   :  { %v1949_v41 = vpop.xlane.xlu1 %1948 }
 0xe58   :  { %3694 = vrcp.f32 %v1949_v41 }
 0xe59   :  { %v1876_v43 = vpop.xlane.xlu0 %1875 }
 0xe5b   :  { %v1879_v42 = vpop.xlane.xlu1 %1878 }
 0xe5c   :  { %3696 = vrcp.f32 %v1879_v42 }
 0xe5d   :  { %3698 = vrcp.f32 %v1876_v43 }
 0xe60   :  { %v3693_v47 = vpop.eup %3692 }
 0xe61   :  { %v1952_v49 = vmul.f32 %v3693_v47, %v3685_v26  ;;  %v3625_v26 = vld [vmem:[%s4938_s12 + $0x68] sm:$0xff]  }
 0xe62   :  { %v3695_v48 = vpop.eup %3694 }
 0xe63   :  { %v1953_v50 = vmul.f32 %v3695_v48, %v3687_v28  ;;  %v3627_v28 = vld [vmem:[%s4938_s12 + $0x78] sm:$0xff]  }
 0xe64   :  { %v3628_v48 = vld [vmem:[#allocation14 + $0x40] sm:$0xff]  }
 0xe65   :  { %v1954_v51 = vpack.c.bf16 %v1953_v50, %v1952_v49  ;;  %v3629_v49 = vld [vmem:[#allocation14 + $0x48] sm:$0xff]   ;;  %v3630_v50 = vld [vmem:[#allocation14 + $0x50] sm:$0xff]  }
 0xe66   :  { %v3697_v52 = vpop.eup %3696 }
 0xe67   :  { %3321 = vmatmul.mubr.msk.bf16.vlgmr.msra.gmra.mrb[24].mxu0 %vm770_vm2, %v1954_v51  ;;  %v3699_v53 = vpop.eup %3698  ;;  %v1883_v54 = vmul.f32 %v3697_v52, %v3691_v32  ;;  %v3631_v51 = vld [vmem:[#allocation14 + $0x58] sm:$0xff]   ;;  %v3632_v52 = vld [vmem:[#allocation14 + $0x60] sm:$0xff]  }
 0xe68   :  { %3325 = vmatpush3.bf16.msra.mxu0 %v1816_v21  ;;  %3326 = vmatprep.mubr.msk.bf16.mxu0 %vm4114_vm1, %v4112_v2  ;;  %v1882_v55 = vmul.f32 %v3699_v53, %v3689_v30  ;;  %v3633_v53 = vld [vmem:[#allocation14 + $0x68] sm:$0xff]  }
 0xe69   :  { %3350 = vmatprep.subr.bf16.mxu0 %v4112_v2 }
 0xe6a   :  { %v1884_v56 = vpack.c.bf16 %v1883_v54, %v1882_v55  ;;  %v3634_v54 = vld [vmem:[#allocation14 + $0x70] sm:$0xff]   ;;  %v3635_v55 = vld [vmem:[#allocation14 + $0x78] sm:$0xff]  }
 0xe73   :  { %3327 = vmatmul.mubr.msk.bf16.vlgmr.msra.gmra.mrb[24].mxu0 %vm770_vm2, %v1884_v56  ;;  %v3034_v56 = vld [vmem:[#allocation13 + $0x1] ss:$0 sm:$0xff] }
 0xe74   :  { %3366 = vmatprep.mubr.msk.bf16.mxu0 %vm4114_vm1, %v4112_v2  ;;  %3351 = vmatpush3.bf16.msra.mxu0 %v3620_v40 }
 0xe75   :  { %3352 = vmatprep.subr.bf16.mxu0 %v4112_v2 }
 0xe78   :  { %3353 = vmatpush3.bf16.msra.mxu0 %v3621_v45 }
 0xe79   :  { %3354 = vmatprep.subr.bf16.mxu0 %v4112_v2 }
 0xe7c   :  { %3355 = vmatpush3.bf16.msra.mxu0 %v3622_v25 }
 0xe7d   :  { %3356 = vmatprep.subr.bf16.mxu0 %v4112_v2 }
 0xe80   :  { %3357 = vmatpush3.bf16.msra.mxu0 %v3623_v11 }
 0xe81   :  { %3358 = vmatprep.subr.bf16.mxu0 %v4112_v2 }
 0xe84   :  { %3359 = vmatpush3.bf16.msra.mxu0 %v3624_v0 }
 0xe85   :  { %3360 = vmatprep.subr.bf16.mxu0 %v4112_v2 }
 0xe88   :  { %3361 = vmatpush3.bf16.msra.mxu0 %v3625_v26 }
 0xe89   :  { %3362 = vmatprep.subr.bf16.mxu0 %v4112_v2 }
 0xe8c   :  { %3363 = vmatpush3.bf16.msra.mxu0 %v3626_v27 }
 0xe8d   :  { %3364 = vmatprep.subr.bf16.mxu0 %v4112_v2 }
 0xe90   :  { %3365 = vmatpush3.bf16.msra.mxu0 %v3627_v28 }
 0xf46   :  { %v2036_v36 = vpop.f32.mrb[24].mxu0 }
 0xf47   :  { %v3328_v21 = vpop.f32.mrb[25].mxu0 }
 0xf48   :  { %v2039_v57 = vpop.f32.mrb[26].mxu0 }
 0xf49   :  { %v2043_v58 = vpack.c.bf16 %v2039_v57, %v2036_v36  ;;  %v3329_v59 = vpop.f32.mrb[27].mxu0 }
 0xf4b   :  { %3347 = vmatmul.mubr.bf16.vlgmr.msra.gmra.mrb[32].mxu1 %v2043_v58 }
 0xf4c   :  { %3386 = vmatprep.mubr.msk.bf16.mxu1 %vm4114_vm1, %v4112_v2  ;;  %3371 = vmatpush3.bf16.msra.mxu1 %v3628_v48 }
 0xf4d   :  { %3372 = vmatprep.subr.bf16.mxu1 %v4112_v2 }
 0xf50   :  { %3373 = vmatpush3.bf16.msra.mxu1 %v3629_v49 }
 0xf51   :  { %3374 = vmatprep.subr.bf16.mxu1 %v4112_v2 }
 0xf54   :  { %3375 = vmatpush3.bf16.msra.mxu1 %v3630_v50  ;;  %v3052_v50 = vld [vmem:[#allocation17 + $0x1] ss:$0 sm:$0xff] }
 0xf55   :  { %3376 = vmatprep.subr.bf16.mxu1 %v4112_v2 }
 0xf58   :  { %3377 = vmatpush3.bf16.msra.mxu1 %v3631_v51 }
 0xf59   :  { %3378 = vmatprep.subr.bf16.mxu1 %v4112_v2 }
 0xf5c   :  { %3379 = vmatpush3.bf16.msra.mxu1 %v3632_v52 }
 0xf5d   :  { %3380 = vmatprep.subr.bf16.mxu1 %v4112_v2 }
 0xf60   :  { %3381 = vmatpush3.bf16.msra.mxu1 %v3633_v53 }
 0xf61   :  { %3382 = vmatprep.subr.bf16.mxu1 %v4112_v2 }
 0xf64   :  { %3383 = vmatpush3.bf16.msra.mxu1 %v3634_v54 }
 0xf65   :  { %3384 = vmatprep.subr.bf16.mxu1 %v4112_v2 }
 0xf68   :  { %3385 = vmatpush3.bf16.msra.mxu1 %v3635_v55 }
 0xf69   :  { %3417 = vmatprep.subr.bf16.mxu1 %v4112_v2 }
0x101e   :  { %v2151_v46 = vpop.f32.mrb[32].mxu1 }
0x101f   :  { %v2152_v60 = vadd.f32 %v3007_v16, %v2151_v46  ;;  %v3348_v61 = vpop.f32.mrb[33].mxu1 }
0x1020   :  { %v2154_v62 = vpop.f32.mrb[34].mxu1 }
0x1021   :  { %v2158_v63 = vadd.f32 %v2152_v60, %v4686_v7  ;;  %v2155_v44 = vadd.f32 %v3007_v16, %v2154_v62  ;;  %v3349_v12 = vpop.f32.mrb[35].mxu1 }
0x1023   :  { %v2159_v9 = vadd.f32 %v2155_v44, %v4688_v8  ;;  %v2164_v38 = vmul.f32 %v4470_v3, %v2158_v63 }
0x1025   :  { %2166 = vadd.xlane.f32.xlu0 %v2164_v38  ;;  %v2165_v10 = vmul.f32 %v4470_v3, %v2159_v9 }
0x1027   :  { %2168 = vadd.xlane.f32.xlu1 %v2165_v10 }
0x10b2   :  { %v2167_v7 = vpop.xlane.xlu0 %2166 }
0x10b3   :  { %v2170_v8 = vmul.f32 0.03125, %v2167_v7 }
0x10b4   :  { %v2169_v13 = vpop.xlane.xlu1 %2168 }
0x10b5   :  { %v2172_v14 = vsub.f32 %v2158_v63, %v2170_v8  ;;  %v2171_v15 = vmul.f32 0.03125, %v2169_v13 }
0x10b7   :  { %v2173_v19 = vsub.f32 %v2159_v9, %v2171_v15  ;;  %v2174_v22 = vmul.f32 %v4470_v3, %v2172_v14 }
0x10b9   :  { %v2176_v4 = vmul.f32 %v2174_v22, %v2174_v22  ;;  %v2175_v23 = vmul.f32 %v4470_v3, %v2173_v19 }
0x10bb   :  { %2178 = vadd.xlane.f32.xlu0 %v2176_v4  ;;  %v2177_v24 = vmul.f32 %v2175_v23, %v2175_v23 }
0x10bd   :  { %2180 = vadd.xlane.f32.xlu1 %v2177_v24 }
0x1148   :  { %v2179_v29 = vpop.xlane.xlu0 %2178 }
0x1149   :  { %v2182_v30 = vmul.f32 0.03125, %v2179_v29 }
0x114a   :  { %v2181_v31 = vpop.xlane.xlu1 %2180 }
0x114b   :  { %v2184_v32 = vadd.f32 1e-12, %v2182_v30  ;;  %v2183_v5 = vmul.f32 0.03125, %v2181_v31 }
0x114d   :  { %3700 = vrsqrt.f32 %v2184_v32  ;;  %v2185_v6 = vadd.f32 1e-12, %v2183_v5 }
0x114f   :  { %3702 = vrsqrt.f32 %v2185_v6 }
0x1157   :  { %v3701_v17 = vpop.eup %3700 }
0x1158   :  { %v2188_v34 = vmul.f32 %v3701_v17, %v2174_v22  ;;  %v3043_v22 = vld [vmem:[#allocation16 + $0x1] ss:$0 sm:$0xff] }
0x1159   :  { %v3703_v35 = vpop.eup %3702 }
0x115a   :  { %v2189_v20 = vmul.f32 %v3703_v35, %v2175_v23  ;;  %v2196_v37 = vmul.f32 %v3016_v33, %v2188_v34 }
0x115c   :  { %v2197_v41 = vmul.f32 %v3016_v33, %v2189_v20  ;;  %v4825_v42 = vadd.f32 %v3017_v39, %v2196_v37  ;;  %v4115_v37 = vmov 0.0|0.0  }
0x115d   :  { %3437 = vmatprep.subr.bf16.mxu0 %v4115_v37 }
0x115e   :  { %v4827_v43 = vadd.f32 %v3017_v39, %v2197_v41 }
0x1160   :  { %v2206_v47 = vpack.c.bf16 %v4827_v43, %v4825_v42 }
0x1162   :  { %3367 = vmatmul.mubr.bf16.vlgmr.msra.gmra.mrb[28].mxu0 %v2206_v47 }
0x1163   :  { %3394 = vmatprep.mubr.msk.f32.mxu0 %vm4114_vm1, %v4112_v2 }
0x1235   :  { %v2314_v18 = vpop.f32.mrb[28].mxu0 }
0x1236   :  { %v2315_v36 = vadd.f32 %v3034_v56, %v2314_v18  ;;  %v3368_v21 = vpop.f32.mrb[29].mxu0 }
0x1237   :  { %v2317_v57 = vpop.f32.mrb[30].mxu0  ;;  %v2502_v21 = vld [vmem:[%s4974_s15] sm:$0x3] }
0x1238   :  { %v2323_v58 = vmul.f32 0.044715, %v2315_v36  ;;  %v2318_v59 = vadd.f32 %v3034_v56, %v2317_v57  ;;  %v3369_v16 = vpop.f32.mrb[31].mxu0  ;;  %v2321_v7 = vmul.f32 0.5, %v2315_v36  ;;  %v3636_v57 = vld [vmem:[%s4944_s18] sm:$0xff]  }
0x1239   :  { %v3639_v16 = vld [vmem:[%s4944_s18 + $0x18] sm:$0xff]  }
0x123a   :  { %v2325_v46 = vmul.f32 %v2323_v58, %v2315_v36  ;;  %v2324_v60 = vmul.f32 0.044715, %v2318_v59  ;;  %v2322_v8 = vmul.f32 0.5, %v2318_v59  ;;  %v3637_v58 = vld [vmem:[%s4944_s18 + $0x8] sm:$0xff]  }
0x123c   :  { %v2327_v61 = vmul.f32 %v2325_v46, %v2315_v36  ;;  %v2326_v62 = vmul.f32 %v2324_v60, %v2318_v59  ;;  %v3640_v46 = vld [vmem:[%s4944_s18 + $0x20] sm:$0xff]   ;;  %v3641_v60 = vld [vmem:[%s4944_s18 + $0x28] sm:$0xff]  }
0x123e   :  { %v2329_v63 = vadd.f32 %v2327_v61, %v2315_v36  ;;  %v2328_v44 = vmul.f32 %v2326_v62, %v2318_v59  ;;  %v3642_v61 = vld [vmem:[%s4944_s18 + $0x30] sm:$0xff]   ;;  %v3643_v62 = vld [vmem:[%s4944_s18 + $0x38] sm:$0xff]  }
0x1240   :  { %v2331_v12 = vmul.f32 0.7978846, %v2329_v63  ;;  %v2330_v9 = vadd.f32 %v2328_v44, %v2318_v59  ;;  %v3638_v59 = vld [vmem:[%s4944_s18 + $0x10] sm:$0xff]   ;;  %v3644_v63 = vld [vmem:[#allocation22] sm:$0xff]   ;;  %v3645_v44 = vld [vmem:[#allocation22 + $0x8] sm:$0xff]  }
0x1242   :  { %3704 = vtanh.f32 %v2331_v12  ;;  %v2332_v38 = vmul.f32 0.7978846, %v2330_v9  ;;  %v3646_v12 = vld [vmem:[#allocation22 + $0x10] sm:$0xff]   ;;  %v3647_v9 = vld [vmem:[#allocation22 + $0x18] sm:$0xff]  }
0x1244   :  { %3706 = vtanh.f32 %v2332_v38 }
0x124c   :  { %v3705_v10 = vpop.eup %3704 }
0x124d   :  { %v2335_v40 = vadd.f32 1.0, %v3705_v10 }
0x124e   :  { %v3707_v45 = vpop.eup %3706 }
0x124f   :  { %v2336_v13 = vadd.f32 1.0, %v3707_v45  ;;  %v2337_v14 = vmul.f32 %v2335_v40, %v2321_v7  ;;  %v3648_v45 = vld [vmem:[#allocation22 + $0x20] sm:$0xff]   ;;  %v3649_v7 = vld [vmem:[#allocation22 + $0x28] sm:$0xff]  }
0x1251   :  { %v2338_v15 = vmul.f32 %v2336_v13, %v2322_v8  ;;  %v3650_v8 = vld [vmem:[#allocation22 + $0x30] sm:$0xff]   ;;  %v3651_v13 = vld [vmem:[#allocation22 + $0x38] sm:$0xff]  }
0x1253   :  { %v2339_v19 = vpack.c.bf16 %v2338_v15, %v2337_v14  ;;  %v3055_v14 = vld [vmem:[#allocation20] ss:$0 sm:$0xff] }
0x1255   :  { %3387 = vmatmul.mubr.bf16.vlgmr.msra.gmra.mrb[36].mxu1 %v2339_v19 }
0x1256   :  { %3433 = vmatprep.mubr.msk.bf16.mxu1 %vm4114_vm1, %v4112_v2  ;;  %3418 = vmatpush3.bf16.msra.mxu1 %v3644_v63 }
0x1257   :  { %3419 = vmatprep.subr.bf16.mxu1 %v4112_v2 }
0x125a   :  { %3420 = vmatpush3.bf16.msra.mxu1 %v3645_v44 }
0x125b   :  { %3421 = vmatprep.subr.bf16.mxu1 %v4112_v2 }
0x125e   :  { %3422 = vmatpush3.bf16.msra.mxu1 %v3646_v12 }
0x125f   :  { %3423 = vmatprep.subr.bf16.mxu1 %v4112_v2 }
0x1262   :  { %3424 = vmatpush3.bf16.msra.mxu1 %v3647_v9 }
0x1263   :  { %3425 = vmatprep.subr.bf16.mxu1 %v4112_v2 }
0x1266   :  { %3426 = vmatpush3.bf16.msra.mxu1 %v3648_v45 }
0x1267   :  { %3427 = vmatprep.subr.bf16.mxu1 %v4112_v2 }
0x126a   :  { %3428 = vmatpush3.bf16.msra.mxu1 %v3649_v7 }
0x126b   :  { %3429 = vmatprep.subr.bf16.mxu1 %v4112_v2 }
0x126e   :  { %3430 = vmatpush3.bf16.msra.mxu1 %v3650_v8 }
0x126f   :  { %3431 = vmatprep.subr.bf16.mxu1 %v4112_v2 }
0x1272   :  { %3432 = vmatpush3.bf16.msra.mxu1 %v3651_v13 }
0x1328   :  { %v2447_v4 = vpop.f32.mrb[36].mxu1 }
0x1329   :  { %v2448_v23 = vadd.f32 %v3043_v22, %v2447_v4  ;;  %v3388_v24 = vpop.f32.mrb[37].mxu1 }
0x132a   :  { %v2450_v25 = vpop.f32.mrb[38].mxu1 }
0x132b   :  { %v2454_v11 = vadd.f32 %v2448_v23, %v4825_v42  ;;  %v2451_v0 = vadd.f32 %v3043_v22, %v2450_v25  ;;  %v3389_v26 = vpop.f32.mrb[39].mxu1 }
0x132d   :  { %v2455_v27 = vadd.f32 %v2451_v0, %v4827_v43  ;;  %v2460_v28 = vmul.f32 %v4470_v3, %v2454_v11 }
0x132f   :  { %2462 = vadd.xlane.f32.xlu0 %v2460_v28  ;;  %v2461_v29 = vmul.f32 %v4470_v3, %v2455_v27 }
0x1331   :  { %2464 = vadd.xlane.f32.xlu1 %v2461_v29 }
0x13bc   :  { %v2463_v30 = vpop.xlane.xlu0 %2462 }
0x13bd   :  { %v2466_v31 = vmul.f32 0.03125, %v2463_v30 }
0x13be   :  { %v2465_v32 = vpop.xlane.xlu1 %2464 }
0x13bf   :  { %v2468_v5 = vsub.f32 %v2454_v11, %v2466_v31  ;;  %v2467_v6 = vmul.f32 0.03125, %v2465_v32  ;;  %v3064_v11 = vld [vmem:[#allocation23] ss:$0 sm:$0xff] }
0x13c1   :  { %v2469_v17 = vsub.f32 %v2455_v27, %v2467_v6  ;;  %v2470_v33 = vmul.f32 %v4470_v3, %v2468_v5 }
0x13c3   :  { %v2472_v34 = vmul.f32 %v2470_v33, %v2470_v33  ;;  %v2471_v35 = vmul.f32 %v4470_v3, %v2469_v17  ;;  %v3053_v3 = vld [vmem:[#allocation19 + $0x1] ss:$0 sm:$0xff] }
0x13c5   :  { %2474 = vadd.xlane.f32.xlu0 %v2472_v34  ;;  %v2473_v20 = vmul.f32 %v2471_v35, %v2471_v35 }
0x13c7   :  { %2476 = vadd.xlane.f32.xlu1 %v2473_v20  ;;  %v2820_v20 = vld [vmem:[%s4975_s29] sm:$0x3] }
0x1452   :  { %v2475_v39 = vpop.xlane.xlu0 %2474 }
0x1453   :  { %v2478_v41 = vmul.f32 0.03125, %v2475_v39 }
0x1454   :  { %v2477_v42 = vpop.xlane.xlu1 %2476 }
0x1455   :  { %v2480_v43 = vadd.f32 1e-12, %v2478_v41  ;;  %v2479_v47 = vmul.f32 0.03125, %v2477_v42 }
0x1457   :  { %3708 = vrsqrt.f32 %v2480_v43  ;;  %v2481_v48 = vadd.f32 1e-12, %v2479_v47 }
0x1459   :  { %3710 = vrsqrt.f32 %v2481_v48 }
0x1461   :  { %v3709_v49 = vpop.eup %3708 }
0x1462   :  { %v2484_v51 = vmul.f32 %v3709_v49, %v2470_v33 }
0x1463   :  { %v3711_v52 = vpop.eup %3710 }
0x1464   :  { %v2485_v53 = vmul.f32 %v3711_v52, %v2471_v35  ;;  %v2492_v54 = vmul.f32 %v3052_v50, %v2484_v51 }
0x1466   :  { %v2493_v55 = vmul.f32 %v3052_v50, %v2485_v53  ;;  %v2500_v56 = vadd.f32 %v3053_v3, %v2492_v54 }
0x1468   :  { %v2501_v18 = vadd.f32 %v3053_v3, %v2493_v55 }
0x146a   :  { %v3438_v36 = vpack.c.bf16 %v2501_v18, %v2500_v56 }
0x146c   :  { %3439 = vmatpush3.bf16.msra.mxu0 %v3438_v36 }
0x146d   :  { %3397 = vmatprep.subr.bf16.mxu0 %v4112_v2 }
0x146f   :  { %3395 = vmatmul.mubr.msk.f32.vlgmr.msra.gmra.mrb[32].mxu0 %vm770_vm2, %v2502_v21 }
0x1470   :  { %3398 = vmatpush3.bf16.msra.mxu0 %v3636_v57  ;;  %3413 = vmatprep.mubr.msk.bf16.mxu0 %vm4114_vm1, %v4112_v2 }
0x1471   :  { %3399 = vmatprep.subr.bf16.mxu0 %v4112_v2 }
0x1474   :  { %3400 = vmatpush3.bf16.msra.mxu0 %v3637_v58 }
0x1475   :  { %3401 = vmatprep.subr.bf16.mxu0 %v4112_v2 }
0x1478   :  { %3402 = vmatpush3.bf16.msra.mxu0 %v3638_v59 }
0x1479   :  { %3403 = vmatprep.subr.bf16.mxu0 %v4112_v2 }
0x147c   :  { %3404 = vmatpush3.bf16.msra.mxu0 %v3639_v16 }
0x147d   :  { %3405 = vmatprep.subr.bf16.mxu0 %v4112_v2 }
0x1480   :  { %3406 = vmatpush3.bf16.msra.mxu0 %v3640_v46 }
0x1481   :  { %3407 = vmatprep.subr.bf16.mxu0 %v4112_v2 }
0x1484   :  { %3408 = vmatpush3.bf16.msra.mxu0 %v3641_v60 }
0x1485   :  { %3409 = vmatprep.subr.bf16.mxu0 %v4112_v2 }
0x1488   :  { %3410 = vmatpush3.bf16.msra.mxu0 %v3642_v61 }
0x1489   :  { %3411 = vmatprep.subr.bf16.mxu0 %v4112_v2 }
0x148c   :  { %3412 = vmatpush3.bf16.msra.mxu0 %v3643_v62 }
0x1542   :  { %v2572_v38 = vpop.f32.mrb[32].mxu0 }
0x1543   :  { %v2576_v10 = vpack.c.bf16 %v2572_v38, %v2572_v38  ;;  %v3396_v40 = vpop.f32.mrb[33].mxu0 }
0x1545   :  { %3414 = vmatmul.mubr.bf16.vlgmr.msra.gmra.mrb[36].mxu0 %v2576_v10 }
0x1618   :  { %v2682_v15 = vpop.f32.mrb[36].mxu0 }
0x1619   :  { %v2683_v19 = vadd.f32 %v3055_v14, %v2682_v15  ;;  %v3415_v22 = vpop.f32.mrb[37].mxu0 }
0x161a   :  { %v2685_v4 = vpop.f32.mrb[38].mxu0 }
0x161b   :  { %3712 = vtanh.f32 %v2683_v19  ;;  %v3416_v23 = vpop.f32.mrb[39].mxu0 }
0x1625   :  { %v3713_v24 = vpop.eup %3712 }
0x1626   :  { %v2689_v25 = vpack.c.bf16 %v3713_v24, %v3713_v24 }
0x1628   :  { %3434 = vmatmul.mubr.bf16.vlgmr.msra.gmra.mrb[40].mxu1 %v2689_v25 }
0x16fb   :  { %v2795_v0 = vpop.f32.mrb[40].mxu1 }
0x16fc   :  { %v2796_v26 = vadd.f32 %v3064_v11, %v2795_v0  ;;  %v3435_v27 = vpop.f32.mrb[41].mxu1 }
0x16fd   :  { %v2798_v2 = vpop.f32.mrb[42].mxu1 }
0x16fe   :  { %v2805_v28 = vsel %vm2802_vm3, %v2796_v26, -1e+30  ;;  %2801 = vst [vmem:[#allocation25] sm:$0x3] %v2796_v26  ;;  %v3436_v29 = vpop.f32.mrb[43].mxu1 }
0x16ff   :  { %v2807_v30 = vsel %vm2806_vm4, %v2805_v28, -inf }
0x1700   :  { %2808 = vmax.xlane.f32.xlu0 %v2807_v30 }
0x178d   :  { %v2809_v31 = vpop.xlane.xlu0 %2808 }
0x178e   :  { %v2810_v32 = vsub.f32 %v2805_v28, %v2809_v31 }
0x1790   :  { %v2811_v5 = vmul.f32 1.442695, %v2810_v32 }
0x1792   :  { %3714 = vpow2.f32 %v2811_v5 }
0x179c   :  { %v3715_v6 = vpop.eup %3714 }
0x179d   :  { %v2813_v17 = vsel %vm2806_vm4, %v3715_v6, 0.0 }
0x179e   :  { %2814 = vadd.xlane.f32.xlu1 %v2813_v17 }
0x182b   :  { %v2815_v33 = vpop.xlane.xlu1 %2814 }
0x182c   :  { %3716 = vlog2.f32 %v2815_v33 }
0x1836   :  { %v3717_v1 = vpop.eup %3716 }
0x1837   :  { %v2817_v34 = vmul.f32 0.6931472, %v3717_v1 }
0x1839   :  { %v2818_v35 = vadd.f32 %v2817_v34, %v2809_v31 }
0x183b   :  { %v2819_v37 = vsub.f32 %v2805_v28, %v2818_v35 }
0x183d   :  { %v2821_v39 = vmul.f32 %v2820_v20, %v2819_v37 }
0x183f   :  { %v2822_v41 = vsel %vm2806_vm4, %v2821_v39, 0.0 }
0x1840   :  { %2823 = vadd.xlane.f32.xlu0 %v2822_v41 }
0x1841   :  { %4037 = shalt.err (!%p4034_p4)
}
0x1842   :  { %s4976_s10 = sld [smem:[#allocation46_spill]] }
0x1848   :  { %s4038_s2 = scalar_lea.hbm %s4976_s10, 32 }
0x1849   :  { %p4039_p5 = scmp.ne.s32.totalorder %s4976_s10, %s4038_s2  ;;  %p4042_p6 = scmp.lt.u32.totalorder %s4038_s2, %s4976_s10 }
0x184b   :  { %p4044_p7 = pnand %p4042_p6, %p4039_p5 }
0x184d   :  { %4047 = shalt.err (!%p4044_p7)
}
0x184e   :  { %2845 = dma.vmem_to_hbm [thread:$0]  %s2843_s1, 32, %s4976_s10, [#allocation4]   ;;  %vm2834_vm5 = vcmask 0  }
0x184f   :  { %s4117_s20 = smov [#allocation26]  }
0x1850   :  { %s2852_s11 = sshll.u32 %s4117_s20, 4  ;;  %s2853_s11 = int_to_ptr.vmem [resolvable:$true] %s2852_s11 }
0x1851   :  { %s4048_s21 = scalar_lea.vmem %s2853_s11, 16  ;;  %s4052_s24 = scalar_lea.vmem %s2853_s11, 32 }
0x1852   :  { %p4049_p8 = scmp.ne.s32.totalorder %s2853_s11, %s4048_s21  ;;  %p4053_p9 = scmp.lt.s32.totalorder %s2853_s11, %s2853_s11 }
0x1853   :  { %p4054_p10 = scmp.lt.s32.totalorder %s4052_s24, %s4048_s21 }
0x1855   :  { %p4055_p11 = por %p4054_p10, %p4053_p9 }
0x1857   :  { %p4056_p12 = pnand %p4055_p11, %p4049_p8 }
0x18cd   :  { %v2824_v42 = vpop.xlane.xlu0 %2823 }
0x18ce   :  { %v2825_v43 = vsub.f32 0.0, %v2824_v42 }
0x18d0   :  { %v2826_v47 = vsel %vm2806_vm4, %v2825_v43, 0.0 }
0x18d1   :  { %v2827_v48 = vrot.slane %v2826_v47, 4 }
0x18d3   :  { %v2828_v49 = vadd.f32 %v2827_v48, %v2826_v47 }
0x18d5   :  { %v2829_v50 = vrot.slane %v2828_v49, 2 }
0x18d7   :  { %v2830_v51 = vadd.f32 %v2829_v50, %v2828_v49 }
0x18d9   :  { %v2831_v52 = vrot.slane %v2830_v51, 1 }
0x18db   :  { %v2832_v53 = vadd.f32 %v2831_v52, %v2830_v51 }
0x18dd   :  { %v2833_v54 = vmul.f32 0.5, %v2832_v53 }
0x18df   :  { %2835 = vst.msk [vmem:[#allocation26] sm:$0x1] %vm2834_vm5, %v2833_v54 }
0x18e0   :  { %4059 = shalt.err (!%p4056_p12)
}
0x18e1   :  { %s4977_s3 = sld [smem:[#allocation47_spill]] }
0x18e7   :  { %s4060_s27 = scalar_lea.hbm %s4977_s3, 16 }
0x18e8   :  { %p4061_p13 = scmp.ne.s32.totalorder %s4977_s3, %s4060_s27  ;;  %p4064_p0 = scmp.lt.u32.totalorder %s4060_s27, %s4977_s3 }
0x18ea   :  { %p4066_p1 = pnand %p4064_p0, %p4061_p13 }
0x18ec   :  { %4069 = shalt.err (!%p4066_p1)
}
0x18ed   :  { %2855 = dma.vmem_to_hbm [thread:$0]  %s2853_s11, 16, %s4977_s3, [#allocation27]  }
0x18ee   :  { %4086 = dma.done.wait [#allocation4], 32  }
0x18ef   :  { %4087 = vsyncadd [#allocation4], 4294967264 }
0x18f0   :  { %4088 = dma.done.wait [#allocation27], 16  }
0x18f1   :  { %4089 = vsyncadd [#allocation27], 4294967280 }
0x18f2   :  { %2862 = vsyncpa [#allocation3], 1 }
0x18f3   :  { %2863 = vsyncpa [#allocation6], 1 }
0x18f4   :  { %2864 = vsyncpa [#allocation9], 1 }
0x18f5   :  { %2865 = vsyncpa [#allocation12], 1 }
0x18f6   :  { %2866 = vsyncpa [#allocation15], 1 }
0x18f7   :  { %2867 = vsyncpa [#allocation18], 1 }
0x18f8   :  { %2868 = vsyncpa [#allocation21], 1 }
0x18f9   :  { %2869 = vsyncpa [#allocation24], 1 }
0x18fa   :  { %2870 = vsyncpa [#allocation4], 1 }
0x18fb   :  { %2871 = vsyncpa [#allocation27], 1 }

</bundles_post_ra>
